<compile_context>
chip_gen: v5e
topology: v5e:2x2
jax: 0.10.0
libtpu: 0.0.40
codegen_flags: <defaults>
</compile_context>

<pallas_src>
import functools

import numpy as np
import jax
import jax.numpy as jnp
from jax import lax
from jax.experimental import pallas as pl
from jax.experimental.pallas import tpu as pltpu


# ------------------------------ Pallas kernel ----------------------------------

def rwkv_block_kernel(
    x_ref,
    ln1_w_ref, ln1_b_ref, ln2_w_ref, ln2_b_ref,
    tmk_ref, tmv_ref, tmr_ref, tmg_ref,
    wr_ref, wk_ref, wv_ref, wg_ref, wo_ref,
    lnx_w_ref, lnx_b_ref,
    tf_ref, wfor_ref, wback_ref, causal_ref, head_id_ref,
    att_state_ref, wkv_bd_ref,
    f_tmk_ref, f_tmr_ref,
    fwk_ref, fwr_ref, fwv_ref,
    ffn_state_ref,
    out_ref,
    *, n_head: int,
):
    Bb, T, C = x_ref.shape            # x block is (Bblk, T, C)
    A = tf_ref.shape[1]               # dim_att = n_head * head_size
    H = n_head
    K = A // H
    N = Bb * T                        # flattened rows for all full-width matmuls

    x = x_ref[...].reshape(N, C)      # merge (Bblk, T) -> rows (layout-preserving)

    def bf16_dot(a, w_ref_):
        return jnp.dot(a.astype(jnp.bfloat16), w_ref_[...],
                       preferred_element_type=jnp.float32)

    def layernorm(v, w_ref_, b_ref_, eps=1e-5):
        mu = jnp.mean(v, axis=-1, keepdims=True)
        var = jnp.mean((v - mu) ** 2, axis=-1, keepdims=True)
        return (v - mu) * lax.rsqrt(var + eps) * w_ref_[...] + b_ref_[...]

    def sigmoid(z):
        # exp + approximate reciprocal both go to the EUP slot.
        return pl.reciprocal(1.0 + jnp.exp(-z), approx=True)

    def time_shift(v, state_ref_):
        # v: (N, C), rows ordered batch-major / time-minor.  Roll by one row and
        # overwrite every per-batch first row with the (batch-broadcast) state;
        # the cross-batch "leak" rows are exactly the overwritten ones.
        rolled = pltpu.roll(v, shift=1, axis=0)
        t_idx = lax.broadcasted_iota(jnp.int32, (N, 1), 0) % T
        return jnp.where(t_idx == 0, state_ref_[...], rolled)

    head_id = head_id_ref[...]                             # (1, A) int32, hoisted
    causal = causal_ref[...]                               # (T, T) f32, strict lower
    wfor = wfor_ref[...]                                   # (N, A) = w**t  (tiled)
    wback = wback_ref[...]                                 # (N, A) = w**(T-1-t)

    # -------------------- attention branch: x + att(ln1(x)) --------------------
    tmk = tmk_ref[...]; tmv = tmv_ref[...]; tmr = tmr_ref[...]; tmg = tmg_ref[...]
    xn = layernorm(x, ln1_w_ref, ln1_b_ref)
    xx = time_shift(xn, att_state_ref)
    xk = xn * tmk + xx * (1.0 - tmk)
    xv = xn * tmv + xx * (1.0 - tmv)
    xr = xn * tmr + xx * (1.0 - tmr)
    xg = xn * tmg + xx * (1.0 - tmg)

    r = bf16_dot(xr, wr_ref)                               # (N, A) f32
    k = bf16_dot(xk, wk_ref)
    v = bf16_dot(xv, wv_ref)
    gg = bf16_dot(xg, wg_ref)
    g = gg * sigmoid(gg)                                   # SiLU gate

    # state term: (r * w^t) @ blockdiag(wkv_state), one deep bf16 matmul.
    term_state = jnp.dot((r * wfor).astype(jnp.bfloat16), wkv_bd_ref[...],
                         preferred_element_type=jnp.float32)

    # "bonus" term: per-head sum_k(u*r*k), broadcast within head, times v.
    # Lane-slice + XLU reduce + (1,A)-masked select -- no MXU, no (A,A) table.
    urk = tf_ref[...] * r * k                              # (N, A) f32
    bsum = jnp.zeros_like(urk)
    for h in range(H):                                     # H static & small
        cs = slice(h * K, (h + 1) * K)
        s = jnp.sum(urk[:, cs], axis=-1, keepdims=True)    # (N, 1)
        bsum = jnp.where(head_id == h, s, bsum)
    bonus = bsum * v

    # strictly-causal pairwise term, per (batch, head):
    #   term_seq[t, c] = sum_{s<t} (sum_{k in head(c)} r[t,k]*k[s,k]*w^(T-1-s)) * v[s,c]
    # scores and scores@v in bf16; contract against the K-column slice of v and
    # concatenate per-head results along lanes (H x fewer MACs than masked v).
    r_bf = r.astype(jnp.bfloat16)
    kk_bf = (k * wback).astype(jnp.bfloat16)
    v_bf = v.astype(jnp.bfloat16)
    rows = []
    for b in range(Bb):
        rs = slice(b * T, (b + 1) * T)
        parts = []
        for h in range(H):
            cs = slice(h * K, (h + 1) * K)
            s_h = lax.dot_general(r_bf[rs, cs], kk_bf[rs, cs],
                                  (((1,), (1,)), ((), ())),
                                  preferred_element_type=jnp.float32)   # (T, T)
            s_h = s_h * causal
            parts.append(jnp.dot(s_h.astype(jnp.bfloat16), v_bf[rs, cs],
                                 preferred_element_type=jnp.float32))   # (T, K)
        rows.append(parts[0] if H == 1 else jnp.concatenate(parts, axis=-1))
    term_seq = rows[0] if Bb == 1 else jnp.concatenate(rows, axis=0)    # (N, A)

    att = term_state + bonus + term_seq
    att = att.astype(jnp.bfloat16).astype(jnp.float32)     # module's bf16 round-trip

    # GroupNorm(H, A, eps=0.00064): per-head two-pass mean/var via lane slices,
    # broadcast back with (1,A)-masked selects (no indicator matmul).
    mean = jnp.zeros_like(att)
    var = jnp.zeros_like(att)
    for h in range(H):
        cs = slice(h * K, (h + 1) * K)
        a_h = att[:, cs]
        m = jnp.mean(a_h, axis=-1, keepdims=True)
        vv = jnp.mean((a_h - m) ** 2, axis=-1, keepdims=True)
        is_h = head_id == h
        mean = jnp.where(is_h, m, mean)
        var = jnp.where(is_h, vv, var)
    gn = (att - mean) * lax.rsqrt(var + 0.00064)
    gn = gn * lnx_w_ref[...] + lnx_b_ref[...]
    gn = gn.astype(jnp.bfloat16).astype(jnp.float32)

    # fused, gated output projection: one deep (N, A) @ (A, C) bf16 matmul
    x2 = x + bf16_dot(gn * g, wo_ref)

    # -------------------- ffn branch: x2 + ffn(ln2(x2)) --------------------
    f_tmk = f_tmk_ref[...]; f_tmr = f_tmr_ref[...]
    xn2 = layernorm(x2, ln2_w_ref, ln2_b_ref)
    xx2 = time_shift(xn2, ffn_state_ref)
    fxk = xn2 * f_tmk + xx2 * (1.0 - f_tmk)
    fxr = xn2 * f_tmr + xx2 * (1.0 - f_tmr)
    hk = bf16_dot(fxk, fwk_ref)                            # (N, F)
    hk = jnp.maximum(hk, 0.0)
    hk = hk * hk
    kv = bf16_dot(hk, fwv_ref)                             # (N, C)
    rr = sigmoid(bf16_dot(fxr, fwr_ref))                   # (N, C)
    out = x2 + rr * kv
    out_ref[...] = out.reshape(Bb, T, C)


# --------------------------------- wrapper --------------------------------------

def _pick_vmem_limit_bytes():
    # ~75% of physical VMEM, capped: ~96 MiB on v5e/v6e (128 MiB physical),
    # ~48 MiB on v7x (64 MiB physical).  Fall back to the compiler default.
    try:
        cap = int(pltpu.get_tpu_info().vmem_capacity_bytes)
    except Exception:
        return None
    return min((cap * 3) // 4, 100 * 1024 * 1024)


def rwkv_block_forward(x, p, *, b_blk=None):
    B, T, C = x.shape
    H, K = p['time_decay'].shape
    A = H * K
    bf16 = jnp.bfloat16

    if b_blk is None:
        b_blk = min(B, max(1, 128 // T))      # aim for >=128-row MXU matmuls
    while B % b_blk:
        b_blk -= 1
    N = b_blk * T

    # ---- batch-invariant tables, computed ONCE outside the grid ----
    w = jnp.exp(-jnp.exp(p['time_decay'].reshape(1, A).astype(jnp.float32)))   # (1, A)
    t = jnp.arange(T, dtype=jnp.float32).reshape(T, 1)
    wfor = jnp.tile(w ** t, (b_blk, 1))                       # (N, A)  w^t
    wback = jnp.tile(w ** (T - 1.0 - t), (b_blk, 1))          # (N, A)  w^(T-1-t)
    causal = jnp.tril(jnp.ones((T, T), jnp.float32), k=-1)    # strict (s < t)
    head_id = (jnp.arange(A, dtype=jnp.int32) // K).reshape(1, A)
    tf_row = p['time_faaaa'].reshape(1, A).astype(jnp.float32)
    eye_h = jnp.eye(H, dtype=jnp.float32)
    wkv_bd = jnp.einsum('hij,hg->higj', p['wkv_state'], eye_h).reshape(A, A).astype(bf16)

    inputs = (
        x,
        p['ln1_w'], p['ln1_b'], p['ln2_w'], p['ln2_b'],
        p['att_tmk'], p['att_tmv'], p['att_tmr'], p['att_tmg'],
        p['att_wr'].astype(bf16), p['att_wk'].astype(bf16),
        p['att_wv'].astype(bf16), p['att_wg'].astype(bf16),
        p['att_wo'].astype(bf16),
        p['lnx_w'], p['lnx_b'],
        tf_row, wfor, wback, causal, head_id,
        p['att_state'], wkv_bd,
        p['ffn_tmk'], p['ffn_tmr'],
        p['ffn_wk'].astype(bf16), p['ffn_wr'].astype(bf16), p['ffn_wv'].astype(bf16),
        p['ffn_state'],
    )

    def resident(a):
        # Whole array, same block for every grid step -> stays VMEM-resident.
        return pl.BlockSpec(a.shape, lambda b, nd=a.ndim: (0,) * nd)

    in_specs = [pl.BlockSpec((b_blk, T, C), lambda b: (b, 0, 0))]   # x: batch block
    in_specs += [resident(a) for a in inputs[1:]]
    out_spec = pl.BlockSpec((b_blk, T, C), lambda b: (b, 0, 0))

    kernel = functools.partial(rwkv_block_kernel, n_head=H)

    cp_kwargs = dict(dimension_semantics=("parallel",))
    vmem_limit = _pick_vmem_limit_bytes()
    if vmem_limit is not None:
        cp_kwargs["vmem_limit_bytes"] = int(vmem_limit)

    return pl.pallas_call(
        kernel,
        out_shape=jax.ShapeDtypeStruct((B, T, C), jnp.float32),
        grid_spec=pltpu.PrefetchScalarGridSpec(
            num_scalar_prefetch=0,
            grid=(B // b_blk,),
            in_specs=in_specs,
            out_specs=out_spec,
        ),
        compiler_params=pltpu.CompilerParams(**cp_kwargs),
    )(*inputs)


# ------------------------ plain-JAX reference (torch-style, f32) ----------------

def jax_reference(x, p):
    B, T, C = x.shape
    H, K = p['time_decay'].shape

    def layernorm(v, w, b, eps=1e-5):
        mu = v.mean(-1, keepdims=True)
        var = ((v - mu) ** 2).mean(-1, keepdims=True)
        return (v - mu) / jnp.sqrt(var + eps) * w + b

    def time_shift(v, state):
        st = jnp.broadcast_to(state[None], (B, 1, C))
        return jnp.concatenate([st, v[:, :-1]], axis=1)

    # attention (RWKV_TimeMix, non-CUDA path, training mode)
    xn = layernorm(x, p['ln1_w'][0], p['ln1_b'][0])
    xx = time_shift(xn, p['att_state'])
    tmk, tmv, tmr, tmg = p['att_tmk'][0], p['att_tmv'][0], p['att_tmr'][0], p['att_tmg'][0]
    xk = xn * tmk + xx * (1 - tmk)
    xv = xn * tmv + xx * (1 - tmv)
    xr = xn * tmr + xx * (1 - tmr)
    xg = xn * tmg + xx * (1 - tmg)
    g = jax.nn.silu(xg @ p['att_wg'])

    def to_heads(z):
        return z.reshape(B, T, H, K).transpose(0, 2, 1, 3).reshape(B * H, T, K)

    r = to_heads(xr @ p['att_wr'])
    k = to_heads(xk @ p['att_wk'])
    v = to_heads(xv @ p['att_wv'])
    w = jnp.exp(-jnp.exp(p['time_decay']))                          # (H, K)
    t = jnp.arange(T, dtype=jnp.float32)
    wfor = jnp.tile(w[:, None, :] ** t[None, :, None], (B, 1, 1))   # (B*H, T, K)
    u = jnp.tile(p['time_faaaa'][:, None, :], (B, 1, 1))            # (B*H, 1, K)
    state = jnp.tile(p['wkv_state'], (B, 1, 1))                     # (B*H, K, K)
    xr_att = jnp.einsum('ntk,nkj->ntj', r * wfor, state)
    xr_att = xr_att + (k * (u * r)).sum(-1, keepdims=True) * v
    wback = wfor[:, ::-1, :].transpose(0, 2, 1)                     # (B*H, K, T)
    kw = k.transpose(0, 2, 1) * wback
    a = jnp.einsum('ntk,nks->nts', r[:, 1:], kw[:, :, :-1])         # (B*H, T-1, T-1)
    a = jnp.where(jnp.tril(jnp.ones((T - 1, T - 1), bool)), a, 0.0)
    xr_att = xr_att.at[:, 1:].add(jnp.einsum('nts,nsk->ntk', a, v[:, :-1]))
    # GroupNorm(H, C) with bf16 round-trip
    z = xr_att.astype(jnp.bfloat16).astype(jnp.float32)
    z = z.reshape(B, H, T, K).transpose(0, 2, 1, 3)                 # (B, T, H, K)
    mu = z.mean(-1, keepdims=True)
    var = ((z - mu) ** 2).mean(-1, keepdims=True)
    gn = (z - mu) / jnp.sqrt(var + 0.00064)
    gn = gn.reshape(B, T, C) * p['lnx_w'][0] + p['lnx_b'][0]
    gn = gn.astype(jnp.bfloat16).astype(jnp.float32)
    x = x + (gn * g) @ p['att_wo']

    # ffn (RWKV_ChannelMix)
    xn2 = layernorm(x, p['ln2_w'][0], p['ln2_b'][0])
    xx2 = time_shift(xn2, p['ffn_state'])
    ftmk, ftmr = p['ffn_tmk'][0], p['ffn_tmr'][0]
    fxk = xn2 * ftmk + xx2 * (1 - ftmk)
    fxr = xn2 * ftmr + xx2 * (1 - ftmr)
    kv = (jnp.maximum(fxk @ p['ffn_wk'], 0.0) ** 2) @ p['ffn_wv']
    return x + jax.nn.sigmoid(fxr @ p['ffn_wr']) * kv


# -------------------------------- parameter init --------------------------------

def init_params(key, C, H, K, F):
    A = H * K
    keys = iter(jax.random.split(key, 32))

    def nrm(shape, scale=0.1):
        return (scale * jax.random.normal(next(keys), shape)).astype(jnp.float32)

    def unif(shape):
        return jax.random.uniform(next(keys), shape, dtype=jnp.float32)

    return dict(
        ln1_w=1.0 + nrm((1, C)), ln1_b=nrm((1, C)),
        ln2_w=1.0 + nrm((1, C)), ln2_b=nrm((1, C)),
        att_tmk=unif((1, C)), att_tmv=unif((1, C)),
        att_tmr=unif((1, C)), att_tmg=unif((1, C)),
        att_wr=nrm((C, A)), att_wk=nrm((C, A)), att_wv=nrm((C, A)),
        att_wg=nrm((C, A)), att_wo=nrm((A, C)),
        lnx_w=1.0 + nrm((1, A)), lnx_b=nrm((1, A)),
        time_decay=nrm((H, K), 0.5), time_faaaa=nrm((H, K), 0.5),
        att_state=nrm((1, C), 1.0),
        wkv_state=nrm((H, K, K), 0.1),
        ffn_tmk=unif((1, C)), ffn_tmr=unif((1, C)),
        ffn_wk=nrm((C, F)), ffn_wr=nrm((C, C)), ffn_wv=nrm((F, C)),
        ffn_state=nrm((1, C), 1.0),
    )


if __name__ == "__main__":
    # Block(layer_id=0, n_layer=2, n_embd=32, n_head=2, head_size=16, dim_att=32, dim_ffn=64)
    B, T, C = 4, 8, 32
    H, K, F = 2, 16, 64

    key = jax.random.PRNGKey(0)
    kx, kp = jax.random.split(key)
    x = jax.random.normal(kx, (B, T, C), dtype=jnp.float32)
    params = init_params(kp, C, H, K, F)

    out = rwkv_block_forward(x, params, b_blk=2)   # 2 batch rows per grid step
    out = jax.block_until_ready(out)

    ref = jax_reference(x, params)
    assert out.shape == (B, T, C)
    assert bool(jnp.all(jnp.isfinite(out)))
    np.testing.assert_allclose(np.asarray(out), np.asarray(ref), rtol=5e-2, atol=5e-2)
    print("KERNEL_OK")
</pallas_src>

<mosaic_0001>
module attributes {stable_mosaic.version = 11 : i64} {
  func.func @rwkv_block_kernel(%arg0: i32, %arg1: memref<2x8x32xf32, #tpu.memory_space<vmem>>, %arg2: memref<1x32xf32, #tpu.memory_space<vmem>>, %arg3: memref<1x32xf32, #tpu.memory_space<vmem>>, %arg4: memref<1x32xf32, #tpu.memory_space<vmem>>, %arg5: memref<1x32xf32, #tpu.memory_space<vmem>>, %arg6: memref<1x32xf32, #tpu.memory_space<vmem>>, %arg7: memref<1x32xf32, #tpu.memory_space<vmem>>, %arg8: memref<1x32xf32, #tpu.memory_space<vmem>>, %arg9: memref<1x32xf32, #tpu.memory_space<vmem>>, %arg10: memref<32x32xbf16, #tpu.memory_space<vmem>>, %arg11: memref<32x32xbf16, #tpu.memory_space<vmem>>, %arg12: memref<32x32xbf16, #tpu.memory_space<vmem>>, %arg13: memref<32x32xbf16, #tpu.memory_space<vmem>>, %arg14: memref<32x32xbf16, #tpu.memory_space<vmem>>, %arg15: memref<1x32xf32, #tpu.memory_space<vmem>>, %arg16: memref<1x32xf32, #tpu.memory_space<vmem>>, %arg17: memref<1x32xf32, #tpu.memory_space<vmem>>, %arg18: memref<16x32xf32, #tpu.memory_space<vmem>>, %arg19: memref<16x32xf32, #tpu.memory_space<vmem>>, %arg20: memref<8x8xf32, #tpu.memory_space<vmem>>, %arg21: memref<1x32xi32, #tpu.memory_space<vmem>>, %arg22: memref<1x32xf32, #tpu.memory_space<vmem>>, %arg23: memref<32x32xbf16, #tpu.memory_space<vmem>>, %arg24: memref<1x32xf32, #tpu.memory_space<vmem>>, %arg25: memref<1x32xf32, #tpu.memory_space<vmem>>, %arg26: memref<32x64xbf16, #tpu.memory_space<vmem>>, %arg27: memref<32x32xbf16, #tpu.memory_space<vmem>>, %arg28: memref<64x32xbf16, #tpu.memory_space<vmem>>, %arg29: memref<1x32xf32, #tpu.memory_space<vmem>>, %arg30: memref<2x8x32xf32, #tpu.memory_space<vmem>>) attributes {dimension_semantics = [#tpu.dimension_semantics<parallel>], iteration_bounds = array<i64: 2>, scalar_prefetch = 0 : i64, scratch_operands = 0 : i64, tpu.core_type = #tpu.core_type<tc>, window_params = [{transform_indices = @transform_0, window_bounds = array<i64: 2, 8, 32>}, {pipeline_mode = #tpu.pipeline_mode<synchronous>, transform_indices = @transform_1, window_bounds = array<i64: 1, 32>}, {pipeline_mode = #tpu.pipeline_mode<synchronous>, transform_indices = @transform_2, window_bounds = array<i64: 1, 32>}, {pipeline_mode = #tpu.pipeline_mode<synchronous>, transform_indices = @transform_3, window_bounds = array<i64: 1, 32>}, {pipeline_mode = #tpu.pipeline_mode<synchronous>, transform_indices = @transform_4, window_bounds = array<i64: 1, 32>}, {pipeline_mode = #tpu.pipeline_mode<synchronous>, transform_indices = @transform_5, window_bounds = array<i64: 1, 32>}, {pipeline_mode = #tpu.pipeline_mode<synchronous>, transform_indices = @transform_6, window_bounds = array<i64: 1, 32>}, {pipeline_mode = #tpu.pipeline_mode<synchronous>, transform_indices = @transform_7, window_bounds = array<i64: 1, 32>}, {pipeline_mode = #tpu.pipeline_mode<synchronous>, transform_indices = @transform_8, window_bounds = array<i64: 1, 32>}, {pipeline_mode = #tpu.pipeline_mode<synchronous>, transform_indices = @transform_9, window_bounds = array<i64: 32, 32>}, {pipeline_mode = #tpu.pipeline_mode<synchronous>, transform_indices = @transform_10, window_bounds = array<i64: 32, 32>}, {pipeline_mode = #tpu.pipeline_mode<synchronous>, transform_indices = @transform_11, window_bounds = array<i64: 32, 32>}, {pipeline_mode = #tpu.pipeline_mode<synchronous>, transform_indices = @transform_12, window_bounds = array<i64: 32, 32>}, {pipeline_mode = #tpu.pipeline_mode<synchronous>, transform_indices = @transform_13, window_bounds = array<i64: 32, 32>}, {pipeline_mode = #tpu.pipeline_mode<synchronous>, transform_indices = @transform_14, window_bounds = array<i64: 1, 32>}, {pipeline_mode = #tpu.pipeline_mode<synchronous>, transform_indices = @transform_15, window_bounds = array<i64: 1, 32>}, {pipeline_mode = #tpu.pipeline_mode<synchronous>, transform_indices = @transform_16, window_bounds = array<i64: 1, 32>}, {pipeline_mode = #tpu.pipeline_mode<synchronous>, transform_indices = @transform_17, window_bounds = array<i64: 16, 32>}, {pipeline_mode = #tpu.pipeline_mode<synchronous>, transform_indices = @transform_18, window_bounds = array<i64: 16, 32>}, {pipeline_mode = #tpu.pipeline_mode<synchronous>, transform_indices = @transform_19, window_bounds = array<i64: 8, 8>}, {pipeline_mode = #tpu.pipeline_mode<synchronous>, transform_indices = @transform_20, window_bounds = array<i64: 1, 32>}, {pipeline_mode = #tpu.pipeline_mode<synchronous>, transform_indices = @transform_21, window_bounds = array<i64: 1, 32>}, {pipeline_mode = #tpu.pipeline_mode<synchronous>, transform_indices = @transform_22, window_bounds = array<i64: 32, 32>}, {pipeline_mode = #tpu.pipeline_mode<synchronous>, transform_indices = @transform_23, window_bounds = array<i64: 1, 32>}, {pipeline_mode = #tpu.pipeline_mode<synchronous>, transform_indices = @transform_24, window_bounds = array<i64: 1, 32>}, {pipeline_mode = #tpu.pipeline_mode<synchronous>, transform_indices = @transform_25, window_bounds = array<i64: 32, 64>}, {pipeline_mode = #tpu.pipeline_mode<synchronous>, transform_indices = @transform_26, window_bounds = array<i64: 32, 32>}, {pipeline_mode = #tpu.pipeline_mode<synchronous>, transform_indices = @transform_27, window_bounds = array<i64: 64, 32>}, {pipeline_mode = #tpu.pipeline_mode<synchronous>, transform_indices = @transform_28, window_bounds = array<i64: 1, 32>}, {transform_indices = @transform_29, window_bounds = array<i64: 2, 8, 32>}]} {
    %c0 = arith.constant 0 : index
    %c0_0 = arith.constant 0 : index
    %c0_1 = arith.constant 0 : index
    %0 = vector.load %arg1[%c0, %c0_0, %c0_1] : memref<2x8x32xf32, #tpu.memory_space<vmem>>, vector<2x8x32xf32>
    %1 = vector.shape_cast %0 : vector<2x8x32xf32> to vector<16x32xf32>
    %c0_2 = arith.constant 0 : index
    %c0_3 = arith.constant 0 : index
    %2 = vector.load %arg21[%c0_2, %c0_3] : memref<1x32xi32, #tpu.memory_space<vmem>>, vector<1x32xi32>
    %c0_4 = arith.constant 0 : index
    %c0_5 = arith.constant 0 : index
    %3 = vector.load %arg20[%c0_4, %c0_5] : memref<8x8xf32, #tpu.memory_space<vmem>>, vector<8x8xf32>
    %c0_6 = arith.constant 0 : index
    %c0_7 = arith.constant 0 : index
    %4 = vector.load %arg18[%c0_6, %c0_7] : memref<16x32xf32, #tpu.memory_space<vmem>>, vector<16x32xf32>
    %c0_8 = arith.constant 0 : index
    %c0_9 = arith.constant 0 : index
    %5 = vector.load %arg19[%c0_8, %c0_9] : memref<16x32xf32, #tpu.memory_space<vmem>>, vector<16x32xf32>
    %c0_10 = arith.constant 0 : index
    %c0_11 = arith.constant 0 : index
    %6 = vector.load %arg6[%c0_10, %c0_11] : memref<1x32xf32, #tpu.memory_space<vmem>>, vector<1x32xf32>
    %c0_12 = arith.constant 0 : index
    %c0_13 = arith.constant 0 : index
    %7 = vector.load %arg7[%c0_12, %c0_13] : memref<1x32xf32, #tpu.memory_space<vmem>>, vector<1x32xf32>
    %c0_14 = arith.constant 0 : index
    %c0_15 = arith.constant 0 : index
    %8 = vector.load %arg8[%c0_14, %c0_15] : memref<1x32xf32, #tpu.memory_space<vmem>>, vector<1x32xf32>
    %c0_16 = arith.constant 0 : index
    %c0_17 = arith.constant 0 : index
    %9 = vector.load %arg9[%c0_16, %c0_17] : memref<1x32xf32, #tpu.memory_space<vmem>>, vector<1x32xf32>
    %cst = arith.constant dense<0.000000e+00> : vector<16xf32>
    %10 = vector.multi_reduction <add>, %1, %cst [1] : vector<16x32xf32> to vector<16xf32>
    %11 = vector.shape_cast %10 : vector<16xf32> to vector<16x1xf32>
    %cst_18 = arith.constant 3.200000e+01 : f32
    %12 = vector.broadcast %cst_18 : f32 to vector<16x1xf32>
    %13 = arith.divf %11, %12 : vector<16x1xf32>
    %14 = vector.broadcast %13 : vector<16x1xf32> to vector<16x32xf32>
    %15 = arith.subf %1, %14 : vector<16x32xf32>
    %16 = arith.mulf %15, %15 : vector<16x32xf32>
    %cst_19 = arith.constant dense<0.000000e+00> : vector<16xf32>
    %17 = vector.multi_reduction <add>, %16, %cst_19 [1] : vector<16x32xf32> to vector<16xf32>
    %18 = vector.shape_cast %17 : vector<16xf32> to vector<16x1xf32>
    %cst_20 = arith.constant 3.200000e+01 : f32
    %19 = vector.broadcast %cst_20 : f32 to vector<16x1xf32>
    %20 = arith.divf %18, %19 : vector<16x1xf32>
    %21 = vector.broadcast %13 : vector<16x1xf32> to vector<16x32xf32>
    %22 = arith.subf %1, %21 : vector<16x32xf32>
    %cst_21 = arith.constant 9.99999974E-6 : f32
    %23 = vector.broadcast %cst_21 : f32 to vector<16x1xf32>
    %24 = arith.addf %20, %23 : vector<16x1xf32>
    %25 = math.rsqrt %24 : vector<16x1xf32>
    %26 = vector.broadcast %25 : vector<16x1xf32> to vector<16x32xf32>
    %27 = arith.mulf %22, %26 : vector<16x32xf32>
    %c0_22 = arith.constant 0 : index
    %c0_23 = arith.constant 0 : index
    %28 = vector.load %arg2[%c0_22, %c0_23] : memref<1x32xf32, #tpu.memory_space<vmem>>, vector<1x32xf32>
    %29 = vector.broadcast %28 : vector<1x32xf32> to vector<16x32xf32>
    %30 = arith.mulf %27, %29 : vector<16x32xf32>
    %c0_24 = arith.constant 0 : index
    %c0_25 = arith.constant 0 : index
    %31 = vector.load %arg3[%c0_24, %c0_25] : memref<1x32xf32, #tpu.memory_space<vmem>>, vector<1x32xf32>
    %32 = vector.broadcast %31 : vector<1x32xf32> to vector<16x32xf32>
    %33 = arith.addf %30, %32 : vector<16x32xf32>
    %c1_i32 = arith.constant 1 : i32
    %34 = tpu.dynamic_rotate %33 by %c1_i32 dim 0 : vector<16x32xf32>, i32 -> vector<16x32xf32>
    %35 = tpu.iota {dimensions = array<i32: 0>} : vector<16x1xi32>
    %c8_i32 = arith.constant 8 : i32
    %c0_i32 = arith.constant 0 : i32
    %36 = arith.cmpi eq, %c8_i32, %c0_i32 : i32
    %c1_i32_26 = arith.constant 1 : i32
    %37 = arith.select %36, %c1_i32_26, %c8_i32 : i32
    %38 = vector.broadcast %37 : i32 to vector<16x1xi32>
    %39 = arith.remsi %35, %38 : vector<16x1xi32>
    %c0_i32_27 = arith.constant 0 : i32
    %40 = vector.broadcast %c0_i32_27 : i32 to vector<16x1xi32>
    %41 = arith.cmpi ne, %39, %40 : vector<16x1xi32>
    %c0_i32_28 = arith.constant 0 : i32
    %42 = vector.broadcast %c0_i32_28 : i32 to vector<16x1xi32>
    %43 = arith.cmpi slt, %39, %42 : vector<16x1xi32>
    %c0_i32_29 = arith.constant 0 : i32
    %44 = arith.cmpi slt, %37, %c0_i32_29 : i32
    %45 = vector.broadcast %44 : i1 to vector<16x1xi1>
    %46 = vector.broadcast %45 : vector<16x1xi1> to vector<16x1xi1>
    %47 = arith.xori %43, %46 : vector<16x1xi1>
    %48 = arith.andi %47, %41 : vector<16x1xi1>
    %49 = vector.broadcast %37 : i32 to vector<16x1xi32>
    %50 = arith.addi %39, %49 : vector<16x1xi32>
    %51 = arith.select %48, %50, %39 : vector<16x1xi1>, vector<16x1xi32>
    %c0_i32_30 = arith.constant 0 : i32
    %52 = vector.broadcast %c0_i32_30 : i32 to vector<16x1xi32>
    %53 = arith.cmpi eq, %51, %52 : vector<16x1xi32>
    %c0_31 = arith.constant 0 : index
    %c0_32 = arith.constant 0 : index
    %54 = vector.load %arg22[%c0_31, %c0_32] : memref<1x32xf32, #tpu.memory_space<vmem>>, vector<1x32xf32>
    %55 = vector.shape_cast %53 : vector<16x1xi1> to vector<16x1xi1>
    %56 = vector.broadcast %55 : vector<16x1xi1> to vector<16x32xi1>
    %57 = vector.shape_cast %54 : vector<1x32xf32> to vector<1x32xf32>
    %58 = vector.broadcast %57 : vector<1x32xf32> to vector<16x32xf32>
    %59 = arith.select %56, %58, %34 : vector<16x32xi1>, vector<16x32xf32>
    %60 = vector.broadcast %6 : vector<1x32xf32> to vector<16x32xf32>
    %61 = arith.mulf %33, %60 : vector<16x32xf32>
    %cst_33 = arith.constant 1.000000e+00 : f32
    %62 = vector.broadcast %cst_33 : f32 to vector<1x32xf32>
    %63 = arith.subf %62, %6 : vector<1x32xf32>
    %64 = vector.broadcast %63 : vector<1x32xf32> to vector<16x32xf32>
    %65 = arith.mulf %59, %64 : vector<16x32xf32>
    %66 = arith.addf %61, %65 : vector<16x32xf32>
    %67 = vector.broadcast %7 : vector<1x32xf32> to vector<16x32xf32>
    %68 = arith.mulf %33, %67 : vector<16x32xf32>
    %cst_34 = arith.constant 1.000000e+00 : f32
    %69 = vector.broadcast %cst_34 : f32 to vector<1x32xf32>
    %70 = arith.subf %69, %7 : vector<1x32xf32>
    %71 = vector.broadcast %70 : vector<1x32xf32> to vector<16x32xf32>
    %72 = arith.mulf %59, %71 : vector<16x32xf32>
    %73 = arith.addf %68, %72 : vector<16x32xf32>
    %74 = vector.broadcast %8 : vector<1x32xf32> to vector<16x32xf32>
    %75 = arith.mulf %33, %74 : vector<16x32xf32>
    %cst_35 = arith.constant 1.000000e+00 : f32
    %76 = vector.broadcast %cst_35 : f32 to vector<1x32xf32>
    %77 = arith.subf %76, %8 : vector<1x32xf32>
    %78 = vector.broadcast %77 : vector<1x32xf32> to vector<16x32xf32>
    %79 = arith.mulf %59, %78 : vector<16x32xf32>
    %80 = arith.addf %75, %79 : vector<16x32xf32>
    %81 = vector.broadcast %9 : vector<1x32xf32> to vector<16x32xf32>
    %82 = arith.mulf %33, %81 : vector<16x32xf32>
    %cst_36 = arith.constant 1.000000e+00 : f32
    %83 = vector.broadcast %cst_36 : f32 to vector<1x32xf32>
    %84 = arith.subf %83, %9 : vector<1x32xf32>
    %85 = vector.broadcast %84 : vector<1x32xf32> to vector<16x32xf32>
    %86 = arith.mulf %59, %85 : vector<16x32xf32>
    %87 = arith.addf %82, %86 : vector<16x32xf32>
    %88 = arith.truncf %80 : vector<16x32xf32> to vector<16x32xbf16>
    %c0_37 = arith.constant 0 : index
    %c0_38 = arith.constant 0 : index
    %89 = vector.load %arg10[%c0_37, %c0_38] : memref<32x32xbf16, #tpu.memory_space<vmem>>, vector<32x32xbf16>
    %cst_39 = arith.constant dense<0.000000e+00> : vector<16x32xf32>
    %90 = tpu.matmul %88, %89, %cst_39 {dimension_numbers = #tpu.dot_dimension_numbers<[1], [0], [0], [1], [0, 0, 1, 1], [], []>} : vector<16x32xbf16>, vector<32x32xbf16>, vector<16x32xf32> -> vector<16x32xf32>
    %91 = arith.truncf %66 : vector<16x32xf32> to vector<16x32xbf16>
    %c0_40 = arith.constant 0 : index
    %c0_41 = arith.constant 0 : index
    %92 = vector.load %arg11[%c0_40, %c0_41] : memref<32x32xbf16, #tpu.memory_space<vmem>>, vector<32x32xbf16>
    %cst_42 = arith.constant dense<0.000000e+00> : vector<16x32xf32>
    %93 = tpu.matmul %91, %92, %cst_42 {dimension_numbers = #tpu.dot_dimension_numbers<[1], [0], [0], [1], [0, 0, 1, 1], [], []>} : vector<16x32xbf16>, vector<32x32xbf16>, vector<16x32xf32> -> vector<16x32xf32>
    %94 = arith.truncf %73 : vector<16x32xf32> to vector<16x32xbf16>
    %c0_43 = arith.constant 0 : index
    %c0_44 = arith.constant 0 : index
    %95 = vector.load %arg12[%c0_43, %c0_44] : memref<32x32xbf16, #tpu.memory_space<vmem>>, vector<32x32xbf16>
    %cst_45 = arith.constant dense<0.000000e+00> : vector<16x32xf32>
    %96 = tpu.matmul %94, %95, %cst_45 {dimension_numbers = #tpu.dot_dimension_numbers<[1], [0], [0], [1], [0, 0, 1, 1], [], []>} : vector<16x32xbf16>, vector<32x32xbf16>, vector<16x32xf32> -> vector<16x32xf32>
    %97 = arith.truncf %87 : vector<16x32xf32> to vector<16x32xbf16>
    %c0_46 = arith.constant 0 : index
    %c0_47 = arith.constant 0 : index
    %98 = vector.load %arg13[%c0_46, %c0_47] : memref<32x32xbf16, #tpu.memory_space<vmem>>, vector<32x32xbf16>
    %cst_48 = arith.constant dense<0.000000e+00> : vector<16x32xf32>
    %99 = tpu.matmul %97, %98, %cst_48 {dimension_numbers = #tpu.dot_dimension_numbers<[1], [0], [0], [1], [0, 0, 1, 1], [], []>} : vector<16x32xbf16>, vector<32x32xbf16>, vector<16x32xf32> -> vector<16x32xf32>
    %cst_49 = arith.constant 0.000000e+00 : f32
    %100 = vector.broadcast %cst_49 : f32 to vector<16x32xf32>
    %101 = arith.subf %100, %99 : vector<16x32xf32>
    %102 = math.exp %101 : vector<16x32xf32>
    %cst_50 = arith.constant 1.000000e+00 : f32
    %103 = vector.broadcast %cst_50 : f32 to vector<16x32xf32>
    %104 = arith.addf %103, %102 : vector<16x32xf32>
    %105 = tpu.reciprocal %104 {approx = true} : vector<16x32xf32> -> vector<16x32xf32>
    %106 = arith.mulf %99, %105 : vector<16x32xf32>
    %107 = arith.mulf %90, %4 : vector<16x32xf32>
    %108 = arith.truncf %107 : vector<16x32xf32> to vector<16x32xbf16>
    %c0_51 = arith.constant 0 : index
    %c0_52 = arith.constant 0 : index
    %109 = vector.load %arg23[%c0_51, %c0_52] : memref<32x32xbf16, #tpu.memory_space<vmem>>, vector<32x32xbf16>
    %cst_53 = arith.constant dense<0.000000e+00> : vector<16x32xf32>
    %110 = tpu.matmul %108, %109, %cst_53 {dimension_numbers = #tpu.dot_dimension_numbers<[1], [0], [0], [1], [0, 0, 1, 1], [], []>} : vector<16x32xbf16>, vector<32x32xbf16>, vector<16x32xf32> -> vector<16x32xf32>
    %c0_54 = arith.constant 0 : index
    %c0_55 = arith.constant 0 : index
    %111 = vector.load %arg17[%c0_54, %c0_55] : memref<1x32xf32, #tpu.memory_space<vmem>>, vector<1x32xf32>
    %112 = vector.broadcast %111 : vector<1x32xf32> to vector<16x32xf32>
    %113 = arith.mulf %112, %90 : vector<16x32xf32>
    %114 = arith.mulf %113, %93 : vector<16x32xf32>
    %cst_56 = arith.constant 0.000000e+00 : f32
    %115 = vector.broadcast %cst_56 : f32 to vector<16x32xf32>
    %116 = vector.extract_strided_slice %114 {offsets = [0, 0], sizes = [16, 16], strides = [1, 1]} : vector<16x32xf32> to vector<16x16xf32>
    %cst_57 = arith.constant dense<0.000000e+00> : vector<16xf32>
    %117 = vector.multi_reduction <add>, %116, %cst_57 [1] : vector<16x16xf32> to vector<16xf32>
    %118 = vector.shape_cast %117 : vector<16xf32> to vector<16x1xf32>
    %c0_i32_58 = arith.constant 0 : i32
    %119 = vector.broadcast %c0_i32_58 : i32 to vector<1x32xi32>
    %120 = arith.cmpi eq, %2, %119 : vector<1x32xi32>
    %121 = vector.shape_cast %120 : vector<1x32xi1> to vector<1x32xi1>
    %122 = vector.broadcast %121 : vector<1x32xi1> to vector<16x32xi1>
    %123 = vector.shape_cast %118 : vector<16x1xf32> to vector<16x1xf32>
    %124 = vector.broadcast %123 : vector<16x1xf32> to vector<16x32xf32>
    %125 = arith.select %122, %124, %115 : vector<16x32xi1>, vector<16x32xf32>
    %126 = vector.extract_strided_slice %114 {offsets = [0, 16], sizes = [16, 16], strides = [1, 1]} : vector<16x32xf32> to vector<16x16xf32>
    %cst_59 = arith.constant dense<0.000000e+00> : vector<16xf32>
    %127 = vector.multi_reduction <add>, %126, %cst_59 [1] : vector<16x16xf32> to vector<16xf32>
    %128 = vector.shape_cast %127 : vector<16xf32> to vector<16x1xf32>
    %c1_i32_60 = arith.constant 1 : i32
    %129 = vector.broadcast %c1_i32_60 : i32 to vector<1x32xi32>
    %130 = arith.cmpi eq, %2, %129 : vector<1x32xi32>
    %131 = vector.shape_cast %130 : vector<1x32xi1> to vector<1x32xi1>
    %132 = vector.broadcast %131 : vector<1x32xi1> to vector<16x32xi1>
    %133 = vector.shape_cast %128 : vector<16x1xf32> to vector<16x1xf32>
    %134 = vector.broadcast %133 : vector<16x1xf32> to vector<16x32xf32>
    %135 = arith.select %132, %134, %125 : vector<16x32xi1>, vector<16x32xf32>
    %136 = arith.mulf %135, %96 : vector<16x32xf32>
    %137 = arith.truncf %90 : vector<16x32xf32> to vector<16x32xbf16>
    %138 = arith.mulf %93, %5 : vector<16x32xf32>
    %139 = arith.truncf %138 : vector<16x32xf32> to vector<16x32xbf16>
    %140 = arith.truncf %96 : vector<16x32xf32> to vector<16x32xbf16>
    %141 = vector.extract_strided_slice %137 {offsets = [0, 0], sizes = [8, 16], strides = [1, 1]} : vector<16x32xbf16> to vector<8x16xbf16>
    %142 = vector.extract_strided_slice %139 {offsets = [0, 0], sizes = [8, 16], strides = [1, 1]} : vector<16x32xbf16> to vector<8x16xbf16>
    %cst_61 = arith.constant dense<0.000000e+00> : vector<8x8xf32>
    %143 = tpu.matmul %141, %142, %cst_61 {dimension_numbers = #tpu.dot_dimension_numbers<[1], [1], [0], [0], [0, 0, 1, 0], [], []>} : vector<8x16xbf16>, vector<8x16xbf16>, vector<8x8xf32> -> vector<8x8xf32>
    %144 = arith.mulf %143, %3 : vector<8x8xf32>
    %145 = arith.truncf %144 : vector<8x8xf32> to vector<8x8xbf16>
    %146 = vector.extract_strided_slice %140 {offsets = [0, 0], sizes = [8, 16], strides = [1, 1]} : vector<16x32xbf16> to vector<8x16xbf16>
    %cst_62 = arith.constant dense<0.000000e+00> : vector<8x16xf32>
    %147 = tpu.matmul %145, %146, %cst_62 {dimension_numbers = #tpu.dot_dimension_numbers<[1], [0], [0], [1], [0, 0, 1, 1], [], []>} : vector<8x8xbf16>, vector<8x16xbf16>, vector<8x16xf32> -> vector<8x16xf32>
    %148 = vector.extract_strided_slice %137 {offsets = [0, 16], sizes = [8, 16], strides = [1, 1]} : vector<16x32xbf16> to vector<8x16xbf16>
    %149 = vector.extract_strided_slice %139 {offsets = [0, 16], sizes = [8, 16], strides = [1, 1]} : vector<16x32xbf16> to vector<8x16xbf16>
    %cst_63 = arith.constant dense<0.000000e+00> : vector<8x8xf32>
    %150 = tpu.matmul %148, %149, %cst_63 {dimension_numbers = #tpu.dot_dimension_numbers<[1], [1], [0], [0], [0, 0, 1, 0], [], []>} : vector<8x16xbf16>, vector<8x16xbf16>, vector<8x8xf32> -> vector<8x8xf32>
    %151 = arith.mulf %150, %3 : vector<8x8xf32>
    %152 = arith.truncf %151 : vector<8x8xf32> to vector<8x8xbf16>
    %153 = vector.extract_strided_slice %140 {offsets = [0, 16], sizes = [8, 16], strides = [1, 1]} : vector<16x32xbf16> to vector<8x16xbf16>
    %cst_64 = arith.constant dense<0.000000e+00> : vector<8x16xf32>
    %154 = tpu.matmul %152, %153, %cst_64 {dimension_numbers = #tpu.dot_dimension_numbers<[1], [0], [0], [1], [0, 0, 1, 1], [], []>} : vector<8x8xbf16>, vector<8x16xbf16>, vector<8x16xf32> -> vector<8x16xf32>
    %155 = tpu.concatenate %147, %154 in 1 : vector<8x16xf32>, vector<8x16xf32> -> vector<8x32xf32>
    %156 = vector.extract_strided_slice %137 {offsets = [8, 0], sizes = [8, 16], strides = [1, 1]} : vector<16x32xbf16> to vector<8x16xbf16>
    %157 = vector.extract_strided_slice %139 {offsets = [8, 0], sizes = [8, 16], strides = [1, 1]} : vector<16x32xbf16> to vector<8x16xbf16>
    %cst_65 = arith.constant dense<0.000000e+00> : vector<8x8xf32>
    %158 = tpu.matmul %156, %157, %cst_65 {dimension_numbers = #tpu.dot_dimension_numbers<[1], [1], [0], [0], [0, 0, 1, 0], [], []>} : vector<8x16xbf16>, vector<8x16xbf16>, vector<8x8xf32> -> vector<8x8xf32>
    %159 = arith.mulf %158, %3 : vector<8x8xf32>
    %160 = arith.truncf %159 : vector<8x8xf32> to vector<8x8xbf16>
    %161 = vector.extract_strided_slice %140 {offsets = [8, 0], sizes = [8, 16], strides = [1, 1]} : vector<16x32xbf16> to vector<8x16xbf16>
    %cst_66 = arith.constant dense<0.000000e+00> : vector<8x16xf32>
    %162 = tpu.matmul %160, %161, %cst_66 {dimension_numbers = #tpu.dot_dimension_numbers<[1], [0], [0], [1], [0, 0, 1, 1], [], []>} : vector<8x8xbf16>, vector<8x16xbf16>, vector<8x16xf32> -> vector<8x16xf32>
    %163 = vector.extract_strided_slice %137 {offsets = [8, 16], sizes = [8, 16], strides = [1, 1]} : vector<16x32xbf16> to vector<8x16xbf16>
    %164 = vector.extract_strided_slice %139 {offsets = [8, 16], sizes = [8, 16], strides = [1, 1]} : vector<16x32xbf16> to vector<8x16xbf16>
    %cst_67 = arith.constant dense<0.000000e+00> : vector<8x8xf32>
    %165 = tpu.matmul %163, %164, %cst_67 {dimension_numbers = #tpu.dot_dimension_numbers<[1], [1], [0], [0], [0, 0, 1, 0], [], []>} : vector<8x16xbf16>, vector<8x16xbf16>, vector<8x8xf32> -> vector<8x8xf32>
    %166 = arith.mulf %165, %3 : vector<8x8xf32>
    %167 = arith.truncf %166 : vector<8x8xf32> to vector<8x8xbf16>
    %168 = vector.extract_strided_slice %140 {offsets = [8, 16], sizes = [8, 16], strides = [1, 1]} : vector<16x32xbf16> to vector<8x16xbf16>
    %cst_68 = arith.constant dense<0.000000e+00> : vector<8x16xf32>
    %169 = tpu.matmul %167, %168, %cst_68 {dimension_numbers = #tpu.dot_dimension_numbers<[1], [0], [0], [1], [0, 0, 1, 1], [], []>} : vector<8x8xbf16>, vector<8x16xbf16>, vector<8x16xf32> -> vector<8x16xf32>
    %170 = tpu.concatenate %162, %169 in 1 : vector<8x16xf32>, vector<8x16xf32> -> vector<8x32xf32>
    %171 = tpu.concatenate %155, %170 in 0 : vector<8x32xf32>, vector<8x32xf32> -> vector<16x32xf32>
    %172 = arith.addf %110, %136 : vector<16x32xf32>
    %173 = arith.addf %172, %171 : vector<16x32xf32>
    %174 = arith.truncf %173 : vector<16x32xf32> to vector<16x32xbf16>
    %175 = arith.extf %174 : vector<16x32xbf16> to vector<16x32xf32>
    %cst_69 = arith.constant 0.000000e+00 : f32
    %176 = vector.broadcast %cst_69 : f32 to vector<16x32xf32>
    %cst_70 = arith.constant 0.000000e+00 : f32
    %177 = vector.broadcast %cst_70 : f32 to vector<16x32xf32>
    %178 = vector.extract_strided_slice %175 {offsets = [0, 0], sizes = [16, 16], strides = [1, 1]} : vector<16x32xf32> to vector<16x16xf32>
    %cst_71 = arith.constant dense<0.000000e+00> : vector<16xf32>
    %179 = vector.multi_reduction <add>, %178, %cst_71 [1] : vector<16x16xf32> to vector<16xf32>
    %180 = vector.shape_cast %179 : vector<16xf32> to vector<16x1xf32>
    %cst_72 = arith.constant 1.600000e+01 : f32
    %181 = vector.broadcast %cst_72 : f32 to vector<16x1xf32>
    %182 = arith.divf %180, %181 : vector<16x1xf32>
    %183 = vector.broadcast %182 : vector<16x1xf32> to vector<16x16xf32>
    %184 = arith.subf %178, %183 : vector<16x16xf32>
    %185 = arith.mulf %184, %184 : vector<16x16xf32>
    %cst_73 = arith.constant dense<0.000000e+00> : vector<16xf32>
    %186 = vector.multi_reduction <add>, %185, %cst_73 [1] : vector<16x16xf32> to vector<16xf32>
    %187 = vector.shape_cast %186 : vector<16xf32> to vector<16x1xf32>
    %cst_74 = arith.constant 1.600000e+01 : f32
    %188 = vector.broadcast %cst_74 : f32 to vector<16x1xf32>
    %189 = arith.divf %187, %188 : vector<16x1xf32>
    %c0_i32_75 = arith.constant 0 : i32
    %190 = vector.broadcast %c0_i32_75 : i32 to vector<1x32xi32>
    %191 = arith.cmpi eq, %2, %190 : vector<1x32xi32>
    %192 = vector.shape_cast %191 : vector<1x32xi1> to vector<1x32xi1>
    %193 = vector.broadcast %192 : vector<1x32xi1> to vector<16x32xi1>
    %194 = vector.shape_cast %182 : vector<16x1xf32> to vector<16x1xf32>
    %195 = vector.broadcast %194 : vector<16x1xf32> to vector<16x32xf32>
    %196 = arith.select %193, %195, %176 : vector<16x32xi1>, vector<16x32xf32>
    %197 = vector.shape_cast %191 : vector<1x32xi1> to vector<1x32xi1>
    %198 = vector.broadcast %197 : vector<1x32xi1> to vector<16x32xi1>
    %199 = vector.shape_cast %189 : vector<16x1xf32> to vector<16x1xf32>
    %200 = vector.broadcast %199 : vector<16x1xf32> to vector<16x32xf32>
    %201 = arith.select %198, %200, %177 : vector<16x32xi1>, vector<16x32xf32>
    %202 = vector.extract_strided_slice %175 {offsets = [0, 16], sizes = [16, 16], strides = [1, 1]} : vector<16x32xf32> to vector<16x16xf32>
    %cst_76 = arith.constant dense<0.000000e+00> : vector<16xf32>
    %203 = vector.multi_reduction <add>, %202, %cst_76 [1] : vector<16x16xf32> to vector<16xf32>
    %204 = vector.shape_cast %203 : vector<16xf32> to vector<16x1xf32>
    %cst_77 = arith.constant 1.600000e+01 : f32
    %205 = vector.broadcast %cst_77 : f32 to vector<16x1xf32>
    %206 = arith.divf %204, %205 : vector<16x1xf32>
    %207 = vector.broadcast %206 : vector<16x1xf32> to vector<16x16xf32>
    %208 = arith.subf %202, %207 : vector<16x16xf32>
    %209 = arith.mulf %208, %208 : vector<16x16xf32>
    %cst_78 = arith.constant dense<0.000000e+00> : vector<16xf32>
    %210 = vector.multi_reduction <add>, %209, %cst_78 [1] : vector<16x16xf32> to vector<16xf32>
    %211 = vector.shape_cast %210 : vector<16xf32> to vector<16x1xf32>
    %cst_79 = arith.constant 1.600000e+01 : f32
    %212 = vector.broadcast %cst_79 : f32 to vector<16x1xf32>
    %213 = arith.divf %211, %212 : vector<16x1xf32>
    %c1_i32_80 = arith.constant 1 : i32
    %214 = vector.broadcast %c1_i32_80 : i32 to vector<1x32xi32>
    %215 = arith.cmpi eq, %2, %214 : vector<1x32xi32>
    %216 = vector.shape_cast %215 : vector<1x32xi1> to vector<1x32xi1>
    %217 = vector.broadcast %216 : vector<1x32xi1> to vector<16x32xi1>
    %218 = vector.shape_cast %206 : vector<16x1xf32> to vector<16x1xf32>
    %219 = vector.broadcast %218 : vector<16x1xf32> to vector<16x32xf32>
    %220 = arith.select %217, %219, %196 : vector<16x32xi1>, vector<16x32xf32>
    %221 = vector.shape_cast %215 : vector<1x32xi1> to vector<1x32xi1>
    %222 = vector.broadcast %221 : vector<1x32xi1> to vector<16x32xi1>
    %223 = vector.shape_cast %213 : vector<16x1xf32> to vector<16x1xf32>
    %224 = vector.broadcast %223 : vector<16x1xf32> to vector<16x32xf32>
    %225 = arith.select %222, %224, %201 : vector<16x32xi1>, vector<16x32xf32>
    %226 = arith.subf %175, %220 : vector<16x32xf32>
    %cst_81 = arith.constant 6.400000e-04 : f32
    %227 = vector.broadcast %cst_81 : f32 to vector<16x32xf32>
    %228 = arith.addf %225, %227 : vector<16x32xf32>
    %229 = math.rsqrt %228 : vector<16x32xf32>
    %230 = arith.mulf %226, %229 : vector<16x32xf32>
    %c0_82 = arith.constant 0 : index
    %c0_83 = arith.constant 0 : index
    %231 = vector.load %arg15[%c0_82, %c0_83] : memref<1x32xf32, #tpu.memory_space<vmem>>, vector<1x32xf32>
    %232 = vector.broadcast %231 : vector<1x32xf32> to vector<16x32xf32>
    %233 = arith.mulf %230, %232 : vector<16x32xf32>
    %c0_84 = arith.constant 0 : index
    %c0_85 = arith.constant 0 : index
    %234 = vector.load %arg16[%c0_84, %c0_85] : memref<1x32xf32, #tpu.memory_space<vmem>>, vector<1x32xf32>
    %235 = vector.broadcast %234 : vector<1x32xf32> to vector<16x32xf32>
    %236 = arith.addf %233, %235 : vector<16x32xf32>
    %237 = arith.truncf %236 : vector<16x32xf32> to vector<16x32xbf16>
    %238 = arith.extf %237 : vector<16x32xbf16> to vector<16x32xf32>
    %239 = arith.mulf %238, %106 : vector<16x32xf32>
    %240 = arith.truncf %239 : vector<16x32xf32> to vector<16x32xbf16>
    %c0_86 = arith.constant 0 : index
    %c0_87 = arith.constant 0 : index
    %241 = vector.load %arg14[%c0_86, %c0_87] : memref<32x32xbf16, #tpu.memory_space<vmem>>, vector<32x32xbf16>
    %cst_88 = arith.constant dense<0.000000e+00> : vector<16x32xf32>
    %242 = tpu.matmul %240, %241, %cst_88 {dimension_numbers = #tpu.dot_dimension_numbers<[1], [0], [0], [1], [0, 0, 1, 1], [], []>} : vector<16x32xbf16>, vector<32x32xbf16>, vector<16x32xf32> -> vector<16x32xf32>
    %243 = arith.addf %1, %242 : vector<16x32xf32>
    %c0_89 = arith.constant 0 : index
    %c0_90 = arith.constant 0 : index
    %244 = vector.load %arg24[%c0_89, %c0_90] : memref<1x32xf32, #tpu.memory_space<vmem>>, vector<1x32xf32>
    %c0_91 = arith.constant 0 : index
    %c0_92 = arith.constant 0 : index
    %245 = vector.load %arg25[%c0_91, %c0_92] : memref<1x32xf32, #tpu.memory_space<vmem>>, vector<1x32xf32>
    %cst_93 = arith.constant dense<0.000000e+00> : vector<16xf32>
    %246 = vector.multi_reduction <add>, %243, %cst_93 [1] : vector<16x32xf32> to vector<16xf32>
    %247 = vector.shape_cast %246 : vector<16xf32> to vector<16x1xf32>
    %cst_94 = arith.constant 3.200000e+01 : f32
    %248 = vector.broadcast %cst_94 : f32 to vector<16x1xf32>
    %249 = arith.divf %247, %248 : vector<16x1xf32>
    %250 = vector.broadcast %249 : vector<16x1xf32> to vector<16x32xf32>
    %251 = arith.subf %243, %250 : vector<16x32xf32>
    %252 = arith.mulf %251, %251 : vector<16x32xf32>
    %cst_95 = arith.constant dense<0.000000e+00> : vector<16xf32>
    %253 = vector.multi_reduction <add>, %252, %cst_95 [1] : vector<16x32xf32> to vector<16xf32>
    %254 = vector.shape_cast %253 : vector<16xf32> to vector<16x1xf32>
    %cst_96 = arith.constant 3.200000e+01 : f32
    %255 = vector.broadcast %cst_96 : f32 to vector<16x1xf32>
    %256 = arith.divf %254, %255 : vector<16x1xf32>
    %257 = vector.broadcast %249 : vector<16x1xf32> to vector<16x32xf32>
    %258 = arith.subf %243, %257 : vector<16x32xf32>
    %cst_97 = arith.constant 9.99999974E-6 : f32
    %259 = vector.broadcast %cst_97 : f32 to vector<16x1xf32>
    %260 = arith.addf %256, %259 : vector<16x1xf32>
    %261 = math.rsqrt %260 : vector<16x1xf32>
    %262 = vector.broadcast %261 : vector<16x1xf32> to vector<16x32xf32>
    %263 = arith.mulf %258, %262 : vector<16x32xf32>
    %c0_98 = arith.constant 0 : index
    %c0_99 = arith.constant 0 : index
    %264 = vector.load %arg4[%c0_98, %c0_99] : memref<1x32xf32, #tpu.memory_space<vmem>>, vector<1x32xf32>
    %265 = vector.broadcast %264 : vector<1x32xf32> to vector<16x32xf32>
    %266 = arith.mulf %263, %265 : vector<16x32xf32>
    %c0_100 = arith.constant 0 : index
    %c0_101 = arith.constant 0 : index
    %267 = vector.load %arg5[%c0_100, %c0_101] : memref<1x32xf32, #tpu.memory_space<vmem>>, vector<1x32xf32>
    %268 = vector.broadcast %267 : vector<1x32xf32> to vector<16x32xf32>
    %269 = arith.addf %266, %268 : vector<16x32xf32>
    %c1_i32_102 = arith.constant 1 : i32
    %270 = tpu.dynamic_rotate %269 by %c1_i32_102 dim 0 : vector<16x32xf32>, i32 -> vector<16x32xf32>
    %271 = tpu.iota {dimensions = array<i32: 0>} : vector<16x1xi32>
    %c8_i32_103 = arith.constant 8 : i32
    %c0_i32_104 = arith.constant 0 : i32
    %272 = arith.cmpi eq, %c8_i32_103, %c0_i32_104 : i32
    %c1_i32_105 = arith.constant 1 : i32
    %273 = arith.select %272, %c1_i32_105, %c8_i32_103 : i32
    %274 = vector.broadcast %273 : i32 to vector<16x1xi32>
    %275 = arith.remsi %271, %274 : vector<16x1xi32>
    %c0_i32_106 = arith.constant 0 : i32
    %276 = vector.broadcast %c0_i32_106 : i32 to vector<16x1xi32>
    %277 = arith.cmpi ne, %275, %276 : vector<16x1xi32>
    %c0_i32_107 = arith.constant 0 : i32
    %278 = vector.broadcast %c0_i32_107 : i32 to vector<16x1xi32>
    %279 = arith.cmpi slt, %275, %278 : vector<16x1xi32>
    %c0_i32_108 = arith.constant 0 : i32
    %280 = arith.cmpi slt, %273, %c0_i32_108 : i32
    %281 = vector.broadcast %280 : i1 to vector<16x1xi1>
    %282 = vector.broadcast %281 : vector<16x1xi1> to vector<16x1xi1>
    %283 = arith.xori %279, %282 : vector<16x1xi1>
    %284 = arith.andi %283, %277 : vector<16x1xi1>
    %285 = vector.broadcast %273 : i32 to vector<16x1xi32>
    %286 = arith.addi %275, %285 : vector<16x1xi32>
    %287 = arith.select %284, %286, %275 : vector<16x1xi1>, vector<16x1xi32>
    %c0_i32_109 = arith.constant 0 : i32
    %288 = vector.broadcast %c0_i32_109 : i32 to vector<16x1xi32>
    %289 = arith.cmpi eq, %287, %288 : vector<16x1xi32>
    %c0_110 = arith.constant 0 : index
    %c0_111 = arith.constant 0 : index
    %290 = vector.load %arg29[%c0_110, %c0_111] : memref<1x32xf32, #tpu.memory_space<vmem>>, vector<1x32xf32>
    %291 = vector.shape_cast %289 : vector<16x1xi1> to vector<16x1xi1>
    %292 = vector.broadcast %291 : vector<16x1xi1> to vector<16x32xi1>
    %293 = vector.shape_cast %290 : vector<1x32xf32> to vector<1x32xf32>
    %294 = vector.broadcast %293 : vector<1x32xf32> to vector<16x32xf32>
    %295 = arith.select %292, %294, %270 : vector<16x32xi1>, vector<16x32xf32>
    %296 = vector.broadcast %244 : vector<1x32xf32> to vector<16x32xf32>
    %297 = arith.mulf %269, %296 : vector<16x32xf32>
    %cst_112 = arith.constant 1.000000e+00 : f32
    %298 = vector.broadcast %cst_112 : f32 to vector<1x32xf32>
    %299 = arith.subf %298, %244 : vector<1x32xf32>
    %300 = vector.broadcast %299 : vector<1x32xf32> to vector<16x32xf32>
    %301 = arith.mulf %295, %300 : vector<16x32xf32>
    %302 = arith.addf %297, %301 : vector<16x32xf32>
    %303 = vector.broadcast %245 : vector<1x32xf32> to vector<16x32xf32>
    %304 = arith.mulf %269, %303 : vector<16x32xf32>
    %cst_113 = arith.constant 1.000000e+00 : f32
    %305 = vector.broadcast %cst_113 : f32 to vector<1x32xf32>
    %306 = arith.subf %305, %245 : vector<1x32xf32>
    %307 = vector.broadcast %306 : vector<1x32xf32> to vector<16x32xf32>
    %308 = arith.mulf %295, %307 : vector<16x32xf32>
    %309 = arith.addf %304, %308 : vector<16x32xf32>
    %310 = arith.truncf %302 : vector<16x32xf32> to vector<16x32xbf16>
    %c0_114 = arith.constant 0 : index
    %c0_115 = arith.constant 0 : index
    %311 = vector.load %arg26[%c0_114, %c0_115] : memref<32x64xbf16, #tpu.memory_space<vmem>>, vector<32x64xbf16>
    %cst_116 = arith.constant dense<0.000000e+00> : vector<16x64xf32>
    %312 = tpu.matmul %310, %311, %cst_116 {dimension_numbers = #tpu.dot_dimension_numbers<[1], [0], [0], [1], [0, 0, 1, 1], [], []>} : vector<16x32xbf16>, vector<32x64xbf16>, vector<16x64xf32> -> vector<16x64xf32>
    %cst_117 = arith.constant 0.000000e+00 : f32
    %313 = vector.broadcast %cst_117 : f32 to vector<16x64xf32>
    %314 = arith.maximumf %312, %313 : vector<16x64xf32>
    %315 = arith.mulf %314, %314 : vector<16x64xf32>
    %316 = arith.truncf %315 : vector<16x64xf32> to vector<16x64xbf16>
    %c0_118 = arith.constant 0 : index
    %c0_119 = arith.constant 0 : index
    %317 = vector.load %arg28[%c0_118, %c0_119] : memref<64x32xbf16, #tpu.memory_space<vmem>>, vector<64x32xbf16>
    %cst_120 = arith.constant dense<0.000000e+00> : vector<16x32xf32>
    %318 = tpu.matmul %316, %317, %cst_120 {dimension_numbers = #tpu.dot_dimension_numbers<[1], [0], [0], [1], [0, 0, 1, 1], [], []>} : vector<16x64xbf16>, vector<64x32xbf16>, vector<16x32xf32> -> vector<16x32xf32>
    %319 = arith.truncf %309 : vector<16x32xf32> to vector<16x32xbf16>
    %c0_121 = arith.constant 0 : index
    %c0_122 = arith.constant 0 : index
    %320 = vector.load %arg27[%c0_121, %c0_122] : memref<32x32xbf16, #tpu.memory_space<vmem>>, vector<32x32xbf16>
    %cst_123 = arith.constant dense<0.000000e+00> : vector<16x32xf32>
    %321 = tpu.matmul %319, %320, %cst_123 {dimension_numbers = #tpu.dot_dimension_numbers<[1], [0], [0], [1], [0, 0, 1, 1], [], []>} : vector<16x32xbf16>, vector<32x32xbf16>, vector<16x32xf32> -> vector<16x32xf32>
    %cst_124 = arith.constant 0.000000e+00 : f32
    %322 = vector.broadcast %cst_124 : f32 to vector<16x32xf32>
    %323 = arith.subf %322, %321 : vector<16x32xf32>
    %324 = math.exp %323 : vector<16x32xf32>
    %cst_125 = arith.constant 1.000000e+00 : f32
    %325 = vector.broadcast %cst_125 : f32 to vector<16x32xf32>
    %326 = arith.addf %325, %324 : vector<16x32xf32>
    %327 = tpu.reciprocal %326 {approx = true} : vector<16x32xf32> -> vector<16x32xf32>
    %328 = arith.mulf %327, %318 : vector<16x32xf32>
    %329 = arith.addf %243, %328 : vector<16x32xf32>
    %330 = vector.shape_cast %329 : vector<16x32xf32> to vector<2x8x32xf32>
    %c0_126 = arith.constant 0 : index
    %c0_127 = arith.constant 0 : index
    %c0_128 = arith.constant 0 : index
    %331 = vector.load %arg30[%c0_126, %c0_127, %c0_128] : memref<2x8x32xf32, #tpu.memory_space<vmem>>, vector<2x8x32xf32>
    tpu.vector_store %arg30[%c0_126, %c0_127, %c0_128], %330 {strides = array<i32>} : memref<2x8x32xf32, #tpu.memory_space<vmem>>, vector<2x8x32xf32>,
    return
  }
  func.func @transform_0(%arg0: i32) -> (i32, i32, i32) {
    %c0_i32 = arith.constant 0 : i32
    %c0_i32_0 = arith.constant 0 : i32
    %c0_i32_1 = arith.constant 0 : i32
    return %arg0, %c0_i32, %c0_i32_0 : i32, i32, i32
  }
  func.func @transform_1(%arg0: i32) -> (i32, i32) {
    %c0_i32 = arith.constant 0 : i32
    %c0_i32_0 = arith.constant 0 : i32
    %c0_i32_1 = arith.constant 0 : i32
    return %c0_i32, %c0_i32_0 : i32, i32
  }
  func.func @transform_2(%arg0: i32) -> (i32, i32) {
    %c0_i32 = arith.constant 0 : i32
    %c0_i32_0 = arith.constant 0 : i32
    %c0_i32_1 = arith.constant 0 : i32
    return %c0_i32, %c0_i32_0 : i32, i32
  }
  func.func @transform_3(%arg0: i32) -> (i32, i32) {
    %c0_i32 = arith.constant 0 : i32
    %c0_i32_0 = arith.constant 0 : i32
    %c0_i32_1 = arith.constant 0 : i32
    return %c0_i32, %c0_i32_0 : i32, i32
  }
  func.func @transform_4(%arg0: i32) -> (i32, i32) {
    %c0_i32 = arith.constant 0 : i32
    %c0_i32_0 = arith.constant 0 : i32
    %c0_i32_1 = arith.constant 0 : i32
    return %c0_i32, %c0_i32_0 : i32, i32
  }
  func.func @transform_5(%arg0: i32) -> (i32, i32) {
    %c0_i32 = arith.constant 0 : i32
    %c0_i32_0 = arith.constant 0 : i32
    %c0_i32_1 = arith.constant 0 : i32
    return %c0_i32, %c0_i32_0 : i32, i32
  }
  func.func @transform_6(%arg0: i32) -> (i32, i32) {
    %c0_i32 = arith.constant 0 : i32
    %c0_i32_0 = arith.constant 0 : i32
    %c0_i32_1 = arith.constant 0 : i32
    return %c0_i32, %c0_i32_0 : i32, i32
  }
  func.func @transform_7(%arg0: i32) -> (i32, i32) {
    %c0_i32 = arith.constant 0 : i32
    %c0_i32_0 = arith.constant 0 : i32
    %c0_i32_1 = arith.constant 0 : i32
    return %c0_i32, %c0_i32_0 : i32, i32
  }
  func.func @transform_8(%arg0: i32) -> (i32, i32) {
    %c0_i32 = arith.constant 0 : i32
    %c0_i32_0 = arith.constant 0 : i32
    %c0_i32_1 = arith.constant 0 : i32
    return %c0_i32, %c0_i32_0 : i32, i32
  }
  func.func @transform_9(%arg0: i32) -> (i32, i32) {
    %c0_i32 = arith.constant 0 : i32
    %c0_i32_0 = arith.constant 0 : i32
    %c0_i32_1 = arith.constant 0 : i32
    return %c0_i32, %c0_i32_0 : i32, i32
  }
  func.func @transform_10(%arg0: i32) -> (i32, i32) {
    %c0_i32 = arith.constant 0 : i32
    %c0_i32_0 = arith.constant 0 : i32
    %c0_i32_1 = arith.constant 0 : i32
    return %c0_i32, %c0_i32_0 : i32, i32
  }
  func.func @transform_11(%arg0: i32) -> (i32, i32) {
    %c0_i32 = arith.constant 0 : i32
    %c0_i32_0 = arith.constant 0 : i32
    %c0_i32_1 = arith.constant 0 : i32
    return %c0_i32, %c0_i32_0 : i32, i32
  }
  func.func @transform_12(%arg0: i32) -> (i32, i32) {
    %c0_i32 = arith.constant 0 : i32
    %c0_i32_0 = arith.constant 0 : i32
    %c0_i32_1 = arith.constant 0 : i32
    return %c0_i32, %c0_i32_0 : i32, i32
  }
  func.func @transform_13(%arg0: i32) -> (i32, i32) {
    %c0_i32 = arith.constant 0 : i32
    %c0_i32_0 = arith.constant 0 : i32
    %c0_i32_1 = arith.constant 0 : i32
    return %c0_i32, %c0_i32_0 : i32, i32
  }
  func.func @transform_14(%arg0: i32) -> (i32, i32) {
    %c0_i32 = arith.constant 0 : i32
    %c0_i32_0 = arith.constant 0 : i32
    %c0_i32_1 = arith.constant 0 : i32
    return %c0_i32, %c0_i32_0 : i32, i32
  }
  func.func @transform_15(%arg0: i32) -> (i32, i32) {
    %c0_i32 = arith.constant 0 : i32
    %c0_i32_0 = arith.constant 0 : i32
    %c0_i32_1 = arith.constant 0 : i32
    return %c0_i32, %c0_i32_0 : i32, i32
  }
  func.func @transform_16(%arg0: i32) -> (i32, i32) {
    %c0_i32 = arith.constant 0 : i32
    %c0_i32_0 = arith.constant 0 : i32
    %c0_i32_1 = arith.constant 0 : i32
    return %c0_i32, %c0_i32_0 : i32, i32
  }
  func.func @transform_17(%arg0: i32) -> (i32, i32) {
    %c0_i32 = arith.constant 0 : i32
    %c0_i32_0 = arith.constant 0 : i32
    %c0_i32_1 = arith.constant 0 : i32
    return %c0_i32, %c0_i32_0 : i32, i32
  }
  func.func @transform_18(%arg0: i32) -> (i32, i32) {
    %c0_i32 = arith.constant 0 : i32
    %c0_i32_0 = arith.constant 0 : i32
    %c0_i32_1 = arith.constant 0 : i32
    return %c0_i32, %c0_i32_0 : i32, i32
  }
  func.func @transform_19(%arg0: i32) -> (i32, i32) {
    %c0_i32 = arith.constant 0 : i32
    %c0_i32_0 = arith.constant 0 : i32
    %c0_i32_1 = arith.constant 0 : i32
    return %c0_i32, %c0_i32_0 : i32, i32
  }
  func.func @transform_20(%arg0: i32) -> (i32, i32) {
    %c0_i32 = arith.constant 0 : i32
    %c0_i32_0 = arith.constant 0 : i32
    %c0_i32_1 = arith.constant 0 : i32
    return %c0_i32, %c0_i32_0 : i32, i32
  }
  func.func @transform_21(%arg0: i32) -> (i32, i32) {
    %c0_i32 = arith.constant 0 : i32
    %c0_i32_0 = arith.constant 0 : i32
    %c0_i32_1 = arith.constant 0 : i32
    return %c0_i32, %c0_i32_0 : i32, i32
  }
  func.func @transform_22(%arg0: i32) -> (i32, i32) {
    %c0_i32 = arith.constant 0 : i32
    %c0_i32_0 = arith.constant 0 : i32
    %c0_i32_1 = arith.constant 0 : i32
    return %c0_i32, %c0_i32_0 : i32, i32
  }
  func.func @transform_23(%arg0: i32) -> (i32, i32) {
    %c0_i32 = arith.constant 0 : i32
    %c0_i32_0 = arith.constant 0 : i32
    %c0_i32_1 = arith.constant 0 : i32
    return %c0_i32, %c0_i32_0 : i32, i32
  }
  func.func @transform_24(%arg0: i32) -> (i32, i32) {
    %c0_i32 = arith.constant 0 : i32
    %c0_i32_0 = arith.constant 0 : i32
    %c0_i32_1 = arith.constant 0 : i32
    return %c0_i32, %c0_i32_0 : i32, i32
  }
  func.func @transform_25(%arg0: i32) -> (i32, i32) {
    %c0_i32 = arith.constant 0 : i32
    %c0_i32_0 = arith.constant 0 : i32
    %c0_i32_1 = arith.constant 0 : i32
    return %c0_i32, %c0_i32_0 : i32, i32
  }
  func.func @transform_26(%arg0: i32) -> (i32, i32) {
    %c0_i32 = arith.constant 0 : i32
    %c0_i32_0 = arith.constant 0 : i32
    %c0_i32_1 = arith.constant 0 : i32
    return %c0_i32, %c0_i32_0 : i32, i32
  }
  func.func @transform_27(%arg0: i32) -> (i32, i32) {
    %c0_i32 = arith.constant 0 : i32
    %c0_i32_0 = arith.constant 0 : i32
    %c0_i32_1 = arith.constant 0 : i32
    return %c0_i32, %c0_i32_0 : i32, i32
  }
  func.func @transform_28(%arg0: i32) -> (i32, i32) {
    %c0_i32 = arith.constant 0 : i32
    %c0_i32_0 = arith.constant 0 : i32
    %c0_i32_1 = arith.constant 0 : i32
    return %c0_i32, %c0_i32_0 : i32, i32
  }
  func.func @transform_29(%arg0: i32) -> (i32, i32, i32) {
    %c0_i32 = arith.constant 0 : i32
    %c0_i32_0 = arith.constant 0 : i32
    %c0_i32_1 = arith.constant 0 : i32
    return %arg0, %c0_i32, %c0_i32_0 : i32, i32, i32
  }
}

</mosaic_0001>

<bundles_post_ra>
// kernel: tpu_custom_call.1
= control target key start
LH: loop header
LB: loop body
LE: loop exit
PB: predicated region body
PF: predicated region fallthrough
CT: control target
= control target key end

     0   :  { %s3808_s6 = smov 1   ;;  %s3809_s10 = smov 2   ;;  %s4610_s0 = inlined_call_operand.smem [shape: u32[30], index: -1, kind: input, shape index: {}] }
   0x1   :  { %s3879_s5 = sld [smem:[%s4610_s0]]   ;;  %s3810_s14 = smov 3  }
   0x2   :  { %s3884_s9 = sld [smem:[%s4610_s0 + %s3808_s6]]   ;;  %s3811_s18 = smov 4  }
   0x3   :  { %s3889_s13 = sld [smem:[%s4610_s0 + %s3809_s10]]   ;;  %s3812_s22 = smov 5  }
   0x4   :  { %s3894_s17 = sld [smem:[%s4610_s0 + %s3810_s14]]   ;;  %s3813_s26 = smov 6  }
   0x5   :  { %s3899_s21 = sld [smem:[%s4610_s0 + %s3811_s18]]   ;;  %s3814_s30 = smov 7  }
   0x6   :  { %s3904_s25 = sld [smem:[%s4610_s0 + %s3812_s22]]   ;;  %s3815_s4 = smov 8  }
   0x7   :  { %4644 = sst [smem:[#allocation52_spill]] %s3879_s5  ;;  %s3816_s10 = smov 9  }
   0x8   :  { %4645 = sst [smem:[#allocation53_spill]] %s3884_s9  ;;  %s3817_s15 = smov 10  }
   0x9   :  { %4646 = sst [smem:[#allocation54_spill]] %s3889_s13  ;;  %s3818_s20 = smov 11  }
   0xa   :  { %s3909_s29 = sld [smem:[%s4610_s0 + %s3813_s26]]   ;;  %s3819_s26 = smov 12  }
   0xb   :  { %s3914_s3 = sld [smem:[%s4610_s0 + %s3814_s30]]   ;;  %s3820_s1 = smov 13  }
   0xc   :  { %s3919_s8 = sld [smem:[%s4610_s0 + %s3815_s4]]   ;;  %s3821_s7 = smov 14  }
   0xd   :  { %s3924_s14 = sld [smem:[%s4610_s0 + %s3816_s10]]   ;;  %s3823_s22 = smov 16  }
   0xe   :  { %s3929_s19 = sld [smem:[%s4610_s0 + %s3817_s15]]   ;;  %s3822_s15 = smov 15  }
   0xf   :  { %s3934_s24 = sld [smem:[%s4610_s0 + %s3818_s20]]   ;;  %s3824_s28 = smov 17  }
  0x10   :  { %s3939_s30 = sld [smem:[%s4610_s0 + %s3819_s26]]  }
  0x11   :  { %4647 = sst [smem:[#allocation55_spill]] %s3914_s3 }
  0x12   :  { %4648 = sst [smem:[#allocation56_spill]] %s3919_s8 }
  0x13   :  { %4649 = sst [smem:[#allocation57_spill]] %s3924_s14 }
  0x14   :  { %4650 = sst [smem:[#allocation58_spill]] %s3929_s19 }
  0x15   :  { %s3944_s6 = sld [smem:[%s4610_s0 + %s3820_s1]]  }
  0x16   :  { %4651 = sst [smem:[#allocation59_spill]] %s3939_s30 }
  0x17   :  { %s3949_s12 = sld [smem:[%s4610_s0 + %s3821_s7]]   ;;  %s3825_s7 = smov 18  }
  0x18   :  { %s3954_s20 = sld [smem:[%s4610_s0 + %s3822_s15]]   ;;  %s3826_s15 = smov 19  }
  0x19   :  { %s3959_s27 = sld [smem:[%s4610_s0 + %s3823_s22]]   ;;  %s3827_s22 = smov 20  }
  0x1a   :  { %s3964_s4 = sld [smem:[%s4610_s0 + %s3824_s28]]   ;;  %s3828_s28 = smov 21  }
  0x1b   :  { %4652 = sst [smem:[#allocation60_spill]] %s3944_s6 }
  0x1c   :  { %s3974_s14 = sld [smem:[%s4610_s0 + %s3826_s15]]   ;;  %s3830_s15 = smov 23  }
  0x1d   :  { %4653 = sst [smem:[#allocation61_spill]] %s3949_s12 }
  0x1e   :  { %4654 = sst [smem:[#allocation62_spill]] %s3954_s20 }
  0x1f   :  { %s3969_s12 = sld [smem:[%s4610_s0 + %s3825_s7]]   ;;  %s3829_s7 = smov 22  }
  0x20   :  { %4655 = sst [smem:[#allocation63_spill]] %s3964_s4 }
  0x21   :  { %s3979_s5 = sld [smem:[%s4610_s0 + %s3827_s22]]   ;;  %s3831_s22 = smov 24  }
  0x22   :  { %4657 = sst [smem:[#allocation65_spill]] %s3974_s14 }
  0x23   :  { %s3984_s4 = sld [smem:[%s4610_s0 + %s3828_s28]]   ;;  %s3832_s28 = smov 25  }
  0x24   :  { %s3989_s20 = sld [smem:[%s4610_s0 + %s3829_s7]]   ;;  %s3833_s7 = smov 26  }
  0x25   :  { %4656 = sst [smem:[#allocation64_spill]] %s3969_s12 }
  0x26   :  { %s3994_s14 = sld [smem:[%s4610_s0 + %s3830_s15]]   ;;  %s3834_s15 = smov 27  }
  0x27   :  { %4658 = sst [smem:[#allocation66_spill]] %s3979_s5 }
  0x28   :  { %s3999_s5 = sld [smem:[%s4610_s0 + %s3831_s22]]   ;;  %s3835_s22 = smov 28  }
  0x29   :  { %4659 = sst [smem:[#allocation67_spill]] %s3984_s4 }
  0x2a   :  { %4660 = sst [smem:[#allocation68_spill]] %s3989_s20 }
  0x2b   :  { %s4004_s30 = sld [smem:[%s4610_s0 + %s3832_s28]]   ;;  %s3836_s28 = smov 29  }
  0x2c   :  { %4661 = sst [smem:[#allocation69_spill]] %s3994_s14 }
  0x2d   :  { %s4009_s20 = sld [smem:[%s4610_s0 + %s3833_s7]]  }
  0x2e   :  { %4662 = sst [smem:[#allocation70_spill]] %s3999_s5 }
  0x2f   :  { %s4014_s19 = sld [smem:[%s4610_s0 + %s3834_s15]]  }
  0x30   :  { %s4019_s5 = sld [smem:[%s4610_s0 + %s3835_s22]]  }
  0x31   :  { %s4024_s3 = sld [smem:[%s4610_s0 + %s3836_s28]]  }
  0x36   :  { %4663 = sst [smem:[#allocation71_spill]] %s4019_s5 }
  0x37   :  { %64 = vsyncpa [#allocation3], 0 }
  0x38   :  { %65 = vsyncpa [#allocation6], 0 }
  0x39   :  { %66 = vsyncpa [#allocation9], 0 }
  0x3a   :  { %67 = vsyncpa [#allocation12], 0 }
  0x3b   :  { %68 = vsyncpa [#allocation15], 0 }
  0x3c   :  { %69 = vsyncpa [#allocation18], 0 }
  0x3d   :  { %70 = vsyncpa [#allocation21], 0 }
  0x3e   :  { %71 = vsyncpa [#allocation24], 0 }
  0x3f   :  { %72 = vsyncpa [#allocation27], 0 }
  0x40   :  { %73 = vsyncpa [#allocation30], 0 }
  0x41   :  { %74 = vsyncpa [#allocation33], 0 }
  0x42   :  { %75 = vsyncpa [#allocation36], 0 }
  0x43   :  { %76 = vsyncpa [#allocation4], 0 }
  0x44   :  { %78 = vsyncpa [#allocation4 + $0x1], 0  ;;  %s4026_s7 = smov 0   ;;  %s4028_s10 = smov 0  }
  0x45   :  { %s4030_s0 = smov 0   ;;  %s4032_s11 = smov 0  }
  0x46 LB: > { %s4664_s14 = sld [smem:[#allocation69_spill]]  ;;  %s4047_s15 = sadd.s32 4294967295, %s3806_s11   ;;  %s3802_s0 = sphi %s4030_s0, %s4718_s0   ;;  %s3798_s10 = sphi %s4028_s10, %s4717_s10   ;;  %s3794_s7 = sphi %s4026_s7, %s4716_s7   ;;  %s3806_s11 = sphi %s4032_s11, %s4713_s11  }
  0x47   : > { %s4665_s13 = sld [smem:[#allocation54_spill]]  ;;  %s2584_s16 = sadd.s32 4294967294, %s3806_s11  }
  0x48   : > { %s4666_s12 = sld [smem:[#allocation64_spill]]  ;;  %s4051_s18 = sadd.s32 1, %s3806_s11  }
  0x49   : > { %s4667_s9 = sld [smem:[#allocation53_spill]]  ;;  %s705_s22 = sadd.s32 1, %s3802_s0 }
  0x4a   : > { %s4668_s6 = sld [smem:[#allocation60_spill]]  ;;  %s702_s23 = ssub.s32 %s3806_s11, %s4051_s18 }
  0x4b   : > { %s4669_s4 = sld [smem:[#allocation67_spill]]  ;;  %p715_p0 = scmp.ne.s32.totalorder %s3802_s0, %s3798_s10 }
  0x4c   : > { %s4670_s8 = sld [smem:[#allocation56_spill]]  ;;  %p703_p1 = scmp.eq.s32.totalorder %s702_s23, 0 }
  0x4d   : > { %4671 = sst [smem:[#allocation72_spill]] %s3794_s7  ;;  %p716_p2 = scmp.eq.s32.totalorder %s4047_s15, 1 }
  0x4e   : > { %4672 = sst [smem:[#allocation73_spill]] %s3802_s0  ;;  %p721_p3 = scmp.ne.s32.totalorder %s3798_s10, %s3794_s7 }
  0x4f   : > { %4673 = sst [smem:[#allocation74_spill]] %s3806_s11  ;;  %p722_p4 = scmp.eq.s32.totalorder %s2584_s16, 1 }
  0x50   : > { %4674 = sst [smem:[#allocation75_spill]] %s4051_s18  ;;  %p4064_p5 = por %p716_p2, %p715_p0 }
  0x51   : > { %s4062_s26 = scalar_select %p703_p1, %s3802_s0, %s705_s22  }
  0x52   : > { %s4676_s28 = scalar_select %p4064_p5, 1, 0 }
  0x53   : > { %4675 = sst [smem:[#allocation76_spill]] %s4062_s26  ;;  %p4068_p6 = por %p722_p4, %p721_p3 }
  0x54   : > { %4677 = sst [smem:[#allocation77_spill]] %s4676_s28  ;;  %p2585_p7 = scmp.ge.s32.totalorder %s3806_s11, 1 }
  0x55   : > { %s4678_s1 = scalar_select %p4068_p6, 1, 0 }
  0x56   : > { %p729_p8 = scmp.lt.s32.totalorder %s3806_s11, 3 }
  0x57   : > { %4679 = sst [smem:[#allocation78_spill]] %s4678_s1 }
  0x58   : > { %p4074_p9 = pnand %p2585_p7, %p729_p8 }
  0x59   : > { %p2858_p10 = scmp.eq.s32.totalorder (!%p4074_p9), %s4047_s15, 0  ;;  %s753_s16 = sshll.u32 (!%p4074_p9), %s4665_s13, 4  ;;  %s754_s16 = int_to_ptr.hbm [resolvable:$true] %s753_s16 }
  0x5a   : > { %733 = sbr.rel (%p4074_p9) target bundleno = 395 (0x18b), region = 12  ;;  %s3837_s22 = smov (!%p4074_p9), [#allocation5]  }
  0x5b   : > { %s755_s23 = sshll.u32 (!%p4074_p9), %s3837_s22, 4  ;;  %s777_s26 = sshll.u32 (!%p4074_p9), %s3899_s21, 4  ;;  %s756_s23 = int_to_ptr.vmem [resolvable:$true] %s755_s23  ;;  %s4083_s26 = int_to_ptr.hbm [resolvable:$true] %s777_s26 }
  0x5c   : > { %s3052_s0 = sshra.s32 (!%p4074_p9), %s754_s16, 4  ;;  %s3058_s1 = scalar_lea.hbm (!%p4074_p9), %s4665_s13, 1  ;;  %s3053_s0 = int_to_ptr.hbm [resolvable:$true] %s3052_s0 }
  0x5d   : > { %s3054_s18 = scalar_lea.hbm (!%p4074_p9), %s3053_s0, 1  ;;  %p3059_p0 = scmp.lt.s32.totalorder (!%p4074_p9), %s3053_s0, %s4665_s13 }
  0x5e   : > { %p3055_p11 = scmp.ne.s32.totalorder (!%p4074_p9), %s3053_s0, %s3054_s18  ;;  %p3060_p1 = scmp.lt.s32.totalorder (!%p4074_p9), %s3058_s1, %s3054_s18 }
  0x60   : > { %p3056_p12 = pnand %p3055_p11, %p2858_p10  ;;  %p3061_p2 = por %p3060_p1, %p3059_p0 }
  0x62   : > { %p3057_p13 = pneg %p3056_p12 }
  0x64   : > { %p3062_p3 = pnand %p3061_p2, %p3057_p13 }
  0x66   : > { %3065 = shalt.err (!%p3062_p3)
}
  0x67   : > { %2763 = dma.hbm_to_vmem [thread:$0]  (%p2858_p10), %s754_s16, 16, %s756_s23, [#allocation6]  }
  0x68   : > { %s801_s22 = sshll.u32 %s3909_s29, 4  ;;  %s3838_s7 = smov [#allocation8]   ;;  %s4092_s22 = int_to_ptr.hbm [resolvable:$true] %s801_s22 }
  0x69   : > { %s779_s11 = sshll.u32 %s3838_s7, 4  ;;  %s3080_s28 = sshra.s32 %s4083_s26, 4  ;;  %s780_s11 = int_to_ptr.vmem [resolvable:$true] %s779_s11  ;;  %s3081_s28 = int_to_ptr.hbm [resolvable:$true] %s3080_s28 }
  0x6a   : > { %s3082_s0 = scalar_lea.hbm %s3081_s28, 1  ;;  %s3086_s18 = scalar_lea.hbm %s3899_s21, 1 }
  0x6b   : > { %p3083_p4 = scmp.ne.s32.totalorder %s3081_s28, %s3082_s0  ;;  %p3087_p11 = scmp.lt.s32.totalorder %s3081_s28, %s3899_s21 }
  0x6c   : > { %p3088_p12 = scmp.lt.s32.totalorder %s3086_s18, %s3082_s0 }
  0x6d   : > { %p3084_p7 = pnand %p3083_p4, %p2858_p10 }
  0x6e   : > { %p3089_p13 = por %p3088_p12, %p3087_p11 }
  0x6f   : > { %p3085_p8 = pneg %p3084_p7 }
  0x71   : > { %p3090_p0 = pnand %p3089_p13, %p3085_p8 }
  0x73   : > { %3093 = shalt.err (!%p3090_p0)
}
  0x74   : > { %2767 = dma.hbm_to_vmem [thread:$0]  (%p2858_p10), %s4083_s26, 16, %s780_s11, [#allocation9]  }
  0x75   : > { %s3839_s7 = smov [#allocation11]   ;;  %s825_s16 = sshll.u32 %s4670_s8, 4  ;;  %s4103_s16 = int_to_ptr.hbm [resolvable:$true] %s825_s16 }
  0x76   : > { %s803_s1 = sshll.u32 %s3839_s7, 4  ;;  %s3108_s28 = sshra.s32 %s4092_s22, 4  ;;  %s804_s1 = int_to_ptr.vmem [resolvable:$true] %s803_s1  ;;  %s3109_s28 = int_to_ptr.hbm [resolvable:$true] %s3108_s28 }
  0x77   : > { %s3110_s23 = scalar_lea.hbm %s3109_s28, 1  ;;  %s3114_s0 = scalar_lea.hbm %s3909_s29, 1 }
  0x78   : > { %p3111_p1 = scmp.ne.s32.totalorder %s3109_s28, %s3110_s23  ;;  %p3115_p4 = scmp.lt.s32.totalorder %s3109_s28, %s3909_s29 }
  0x79   : > { %p3116_p7 = scmp.lt.s32.totalorder %s3114_s0, %s3110_s23 }
  0x7a   : > { %p3112_p2 = pnand %p3111_p1, %p2858_p10 }
  0x7b   : > { %p3117_p8 = por %p3116_p7, %p3115_p4 }
  0x7c   : > { %p3113_p3 = pneg %p3112_p2 }
  0x7e   : > { %p3118_p11 = pnand %p3117_p8, %p3113_p3 }
  0x80   : > { %3121 = shalt.err (!%p3118_p11)
}
  0x81   : > { %2771 = dma.hbm_to_vmem [thread:$0]  (%p2858_p10), %s4092_s22, 16, %s804_s1, [#allocation12]  }
  0x82   : > { %s3840_s11 = smov [#allocation14]   ;;  %s853_s18 = sshll.u32 %s3934_s24, 4  ;;  %s854_s18 = int_to_ptr.hbm [resolvable:$true] %s853_s18 }
  0x83   : > { %s827_s26 = sshll.u32 %s3840_s11, 4  ;;  %s3136_s7 = sshra.s32 %s4103_s16, 4  ;;  %s828_s26 = int_to_ptr.vmem [resolvable:$true] %s827_s26  ;;  %s3137_s7 = int_to_ptr.hbm [resolvable:$true] %s3136_s7 }
  0x84   : > { %s3138_s28 = scalar_lea.hbm %s3137_s7, 1  ;;  %s3142_s23 = scalar_lea.hbm %s4670_s8, 1 }
  0x85   : > { %p3139_p12 = scmp.ne.s32.totalorder %s3137_s7, %s3138_s28  ;;  %p3143_p1 = scmp.lt.s32.totalorder %s3137_s7, %s4670_s8 }
  0x86   : > { %p3144_p2 = scmp.lt.s32.totalorder %s3142_s23, %s3138_s28 }
  0x87   : > { %p3140_p13 = pnand %p3139_p12, %p2858_p10 }
  0x88   : > { %p3145_p3 = por %p3144_p2, %p3143_p1 }
  0x89   : > { %p3141_p0 = pneg %p3140_p13 }
  0x8b   : > { %p3146_p4 = pnand %p3145_p3, %p3141_p0 }
  0x8d   : > { %3149 = shalt.err (!%p3146_p4)
}
  0x8e   : > { %2775 = dma.hbm_to_vmem [thread:$0]  (%p2858_p10), %s4103_s16, 16, %s828_s26, [#allocation15]  }
  0x8f   : > { %s3841_s22 = smov [#allocation17]   ;;  %s881_s0 = sshll.u32 %s4668_s6, 4  ;;  %s4123_s0 = int_to_ptr.hbm [resolvable:$true] %s881_s0 }
  0x90   : > { %s855_s1 = sshll.u32 %s3841_s22, 4  ;;  %s3164_s11 = sshra.s32 %s854_s18, 4  ;;  %s856_s1 = int_to_ptr.vmem [resolvable:$true] %s855_s1  ;;  %s3165_s11 = int_to_ptr.hbm [resolvable:$true] %s3164_s11 }
  0x91   : > { %s3166_s7 = scalar_lea.hbm %s3165_s11, 16  ;;  %s3170_s28 = scalar_lea.hbm %s3934_s24, 16 }
  0x92   : > { %p3167_p7 = scmp.ne.s32.totalorder %s3165_s11, %s3166_s7  ;;  %p3171_p12 = scmp.lt.s32.totalorder %s3165_s11, %s3934_s24 }
  0x93   : > { %p3172_p13 = scmp.lt.s32.totalorder %s3170_s28, %s3166_s7 }
  0x94   : > { %p3168_p8 = pnand %p3167_p7, %p2858_p10 }
  0x95   : > { %p3173_p0 = por %p3172_p13, %p3171_p12 }
  0x96   : > { %p3169_p11 = pneg %p3168_p8 }
  0x98   : > { %p3174_p1 = pnand %p3173_p0, %p3169_p11 }
  0x9a   : > { %3177 = shalt.err (!%p3174_p1)
}
  0x9b   : > { %s4629_s16 = smov 64   ;;  %s4631_s26 = smov 4  }
  0x9c   : > { %2779 = dma.hbm_to_vmem [thread:$0]  (%p2858_p10), %s854_s18, 256, %s856_s1, [#allocation18], %s4629_s16, %s4629_s16, %s4631_s26  }
  0x9d   : > { %s911_s23 = sshll.u32 %s3959_s27, 4  ;;  %s3844_s22 = smov [#allocation20]   ;;  %s4135_s23 = int_to_ptr.hbm [resolvable:$true] %s911_s23 }
  0x9e   : > { %s883_s11 = sshll.u32 %s3844_s22, 4  ;;  %s3192_s7 = sshra.s32 %s4123_s0, 4  ;;  %s884_s11 = int_to_ptr.vmem [resolvable:$true] %s883_s11  ;;  %s3193_s7 = int_to_ptr.hbm [resolvable:$true] %s3192_s7 }
  0x9f   : > { %s3194_s28 = scalar_lea.hbm %s3193_s7, 16  ;;  %s3198_s8 = scalar_lea.hbm %s4668_s6, 16 }
  0xa0   : > { %p3195_p2 = scmp.ne.s32.totalorder %s3193_s7, %s3194_s28  ;;  %p3199_p7 = scmp.lt.s32.totalorder %s3193_s7, %s4668_s6 }
  0xa1   : > { %p3200_p8 = scmp.lt.s32.totalorder %s3198_s8, %s3194_s28 }
  0xa2   : > { %p3196_p3 = pnand %p3195_p2, %p2858_p10 }
  0xa3   : > { %p3201_p11 = por %p3200_p8, %p3199_p7 }
  0xa4   : > { %p3197_p4 = pneg %p3196_p3 }
  0xa6   : > { %p3202_p12 = pnand %p3201_p11, %p3197_p4 }
  0xa8   : > { %3205 = shalt.err (!%p3202_p12)
}
  0xa9   : > { %2783 = dma.hbm_to_vmem [thread:$0]  (%p2858_p10), %s4123_s0, 256, %s884_s11, [#allocation21], %s4629_s16, %s4629_s16, %s4631_s26  }
  0xaa   : > { %s3845_s18 = smov [#allocation23]   ;;  %s3220_s22 = sshra.s32 %s4135_s23, 4  ;;  %s3221_s22 = int_to_ptr.hbm [resolvable:$true] %s3220_s22 }
  0xab   : > { %s913_s1 = sshll.u32 %s3845_s18, 4  ;;  %s3222_s8 = scalar_lea.hbm %s3221_s22, 1  ;;  %s914_s1 = int_to_ptr.vmem [resolvable:$true] %s913_s1 }
  0xac   : > { %p3223_p13 = scmp.ne.s32.totalorder %s3221_s22, %s3222_s8  ;;  %s3226_s7 = scalar_lea.hbm %s3959_s27, 1 }
  0xad   : > { %p3227_p2 = scmp.lt.s32.totalorder %s3221_s22, %s3959_s27  ;;  %p3228_p3 = scmp.lt.s32.totalorder %s3226_s7, %s3222_s8 }
  0xae   : > { %p3224_p0 = pnand %p3223_p13, %p2858_p10 }
  0xaf   : > { %p3229_p4 = por %p3228_p3, %p3227_p2 }
  0xb0   : > { %p3225_p1 = pneg %p3224_p0 }
  0xb2   : > { %p3230_p7 = pnand %p3229_p4, %p3225_p1 }
  0xb4   : > { %3233 = shalt.err (!%p3230_p7)
}
  0xb5   : > { %2787 = dma.hbm_to_vmem [thread:$0]  (%p2858_p10), %s4135_s23, 16, %s914_s1, [#allocation24]  }
  0xb6   : > { %s936_s0 = sshll.u32 %s4666_s12, 4  ;;  %s3846_s11 = smov [#allocation26]   ;;  %s937_s0 = int_to_ptr.hbm [resolvable:$true] %s936_s0 }
  0xb7   : > { %s938_s28 = sshll.u32 %s3846_s11, 4  ;;  %s966_s18 = sshll.u32 %s4669_s4, 4  ;;  %s939_s28 = int_to_ptr.vmem [resolvable:$true] %s938_s28  ;;  %s967_s18 = int_to_ptr.hbm [resolvable:$true] %s966_s18 }
  0xb8   : > { %s3248_s22 = sshra.s32 %s937_s0, 4  ;;  %s3254_s7 = scalar_lea.hbm %s4666_s12, 16  ;;  %s3249_s22 = int_to_ptr.hbm [resolvable:$true] %s3248_s22 }
  0xb9   : > { %s3250_s8 = scalar_lea.hbm %s3249_s22, 16  ;;  %p3255_p13 = scmp.lt.s32.totalorder %s3249_s22, %s4666_s12 }
  0xba   : > { %p3251_p8 = scmp.ne.s32.totalorder %s3249_s22, %s3250_s8  ;;  %p3256_p0 = scmp.lt.s32.totalorder %s3254_s7, %s3250_s8 }
  0xbc   : > { %p3252_p11 = pnand %p3251_p8, %p2858_p10  ;;  %p3257_p1 = por %p3256_p0, %p3255_p13 }
  0xbe   : > { %p3253_p12 = pneg %p3252_p11 }
  0xc0   : > { %p3258_p2 = pnand %p3257_p1, %p3253_p12 }
  0xc2   : > { %3261 = shalt.err (!%p3258_p2)
}
  0xc3   : > { %s4633_s23 = smov 128   ;;  %s4634_s1 = smov 8  }
  0xc4   : > { %2791 = dma.hbm_to_vmem [thread:$0]  (%p2858_p10), %s937_s0, 256, %s939_s28, [#allocation27], %s4633_s23, %s4633_s23, %s4634_s1  }
  0xc5   : > { %s3849_s11 = smov [#allocation29]   ;;  %s992_s22 = sshll.u32 %s4664_s14, 4  ;;  %s4168_s22 = int_to_ptr.hbm [resolvable:$true] %s992_s22 }
  0xc6   : > { %s968_s16 = sshll.u32 %s3849_s11, 4  ;;  %s3276_s8 = sshra.s32 %s967_s18, 4  ;;  %s969_s16 = int_to_ptr.vmem [resolvable:$true] %s968_s16  ;;  %s3277_s8 = int_to_ptr.hbm [resolvable:$true] %s3276_s8 }
  0xc7   : > { %s3278_s7 = scalar_lea.hbm %s3277_s8, 1  ;;  %s3282_s26 = scalar_lea.hbm %s4669_s4, 1 }
  0xc8   : > { %p3279_p3 = scmp.ne.s32.totalorder %s3277_s8, %s3278_s7  ;;  %p3283_p8 = scmp.lt.s32.totalorder %s3277_s8, %s4669_s4 }
  0xc9   : > { %p3284_p11 = scmp.lt.s32.totalorder %s3282_s26, %s3278_s7 }
  0xca   : > { %p3280_p4 = pnand %p3279_p3, %p2858_p10 }
  0xcb   : > { %p3285_p12 = por %p3284_p11, %p3283_p8 }
  0xcc   : > { %p3281_p7 = pneg %p3280_p4 }
  0xce   : > { %p3286_p13 = pnand %p3285_p12, %p3281_p7 }
  0xd0   : > { %3289 = shalt.err (!%p3286_p13)
}
  0xd1   : > { %2795 = dma.hbm_to_vmem [thread:$0]  (%p2858_p10), %s967_s18, 16, %s969_s16, [#allocation30]  }
  0xd2   : > { %s1015_s0 = sshll.u32 %s4004_s30, 4  ;;  %s3850_s28 = smov [#allocation32]   ;;  %s4177_s0 = int_to_ptr.hbm [resolvable:$true] %s1015_s0 }
  0xd3   : > { %s994_s11 = sshll.u32 %s3850_s28, 4  ;;  %s3304_s23 = sshra.s32 %s4168_s22, 4  ;;  %s995_s11 = int_to_ptr.vmem [resolvable:$true] %s994_s11  ;;  %s3305_s23 = int_to_ptr.hbm [resolvable:$true] %s3304_s23 }
  0xd4   : > { %s3306_s26 = scalar_lea.hbm %s3305_s23, 1  ;;  %s3310_s8 = scalar_lea.hbm %s4664_s14, 1 }
  0xd5   : > { %p3307_p0 = scmp.ne.s32.totalorder %s3305_s23, %s3306_s26  ;;  %p3311_p3 = scmp.lt.s32.totalorder %s3305_s23, %s4664_s14 }
  0xd6   : > { %p3312_p4 = scmp.lt.s32.totalorder %s3310_s8, %s3306_s26 }
  0xd7   : > { %p3308_p1 = pnand %p3307_p0, %p2858_p10 }
  0xd8   : > { %p3313_p7 = por %p3312_p4, %p3311_p3 }
  0xd9   : > { %p3309_p2 = pneg %p3308_p1 }
  0xdb   : > { %p3314_p8 = pnand %p3313_p7, %p3309_p2 }
  0xdd   : > { %3317 = shalt.err (!%p3314_p8)
}
  0xde   : > { %2799 = dma.hbm_to_vmem [thread:$0]  (%p2858_p10), %s4168_s22, 16, %s995_s11, [#allocation33]  }
  0xdf   : > { %s3851_s16 = smov [#allocation35]   ;;  %s741_s7 = sshll.u32 %s4667_s9, 4  ;;  %s742_s7 = int_to_ptr.hbm [resolvable:$true] %s741_s7 }
  0xe0   : > { %s1017_s18 = sshll.u32 %s3851_s16, 4  ;;  %s3332_s28 = sshra.s32 %s4177_s0, 4  ;;  %s1018_s18 = int_to_ptr.vmem [resolvable:$true] %s1017_s18  ;;  %s3333_s28 = int_to_ptr.hbm [resolvable:$true] %s3332_s28 }
  0xe1   : > { %s3334_s23 = scalar_lea.hbm %s3333_s28, 16  ;;  %s3338_s26 = scalar_lea.hbm %s4004_s30, 16 }
  0xe2   : > { %p3335_p11 = scmp.ne.s32.totalorder %s3333_s28, %s3334_s23  ;;  %p3339_p0 = scmp.lt.s32.totalorder %s3333_s28, %s4004_s30 }
  0xe3   : > { %p3340_p1 = scmp.lt.s32.totalorder %s3338_s26, %s3334_s23 }
  0xe4   : > { %p3336_p12 = pnand %p3335_p11, %p2858_p10 }
  0xe5   : > { %p3341_p2 = por %p3340_p1, %p3339_p0 }
  0xe6   : > { %p3337_p13 = pneg %p3336_p12 }
  0xe8   : > { %p3342_p3 = pnand %p3341_p2, %p3337_p13 }
  0xea   : > { %3345 = shalt.err (!%p3342_p3)
}
  0xeb   : > { %s4681_s22 = smov 4   ;;  %s4682_s11 = smov 64  }
  0xec   : > { %2803 = dma.hbm_to_vmem [thread:$0]  (%p2858_p10), %s4177_s0, 256, %s1018_s18, [#allocation36], %s4682_s11, %s4682_s11, %s4681_s22  }
  0xed   : > { %s3852_s8 = smov [#allocation2]   ;;  %s765_s1 = sshll.u32 %s3894_s17, 4  ;;  %s4200_s1 = int_to_ptr.hbm [resolvable:$true] %s765_s1 }
  0xee   : > { %s743_s16 = sshll.u32 %s3852_s8, 4  ;;  %s3360_s28 = sshra.s32 %s742_s7, 4  ;;  %s744_s16 = int_to_ptr.vmem [resolvable:$true] %s743_s16  ;;  %s3361_s28 = int_to_ptr.hbm [resolvable:$true] %s3360_s28 }
  0xef   : > { %s3362_s23 = scalar_lea.hbm %s3361_s28, 1  ;;  %s3366_s26 = scalar_lea.hbm %s4667_s9, 1 }
  0xf0   : > { %p3363_p4 = scmp.ne.s32.totalorder %s3361_s28, %s3362_s23  ;;  %p3367_p11 = scmp.lt.s32.totalorder %s3361_s28, %s4667_s9 }
  0xf1   : > { %p3368_p12 = scmp.lt.s32.totalorder %s3366_s26, %s3362_s23 }
  0xf2   : > { %p3364_p7 = pnand %p3363_p4, %p2858_p10 }
  0xf3   : > { %p3369_p13 = por %p3368_p12, %p3367_p11 }
  0xf4   : > { %p3365_p8 = pneg %p3364_p7 }
  0xf6   : > { %p3370_p0 = pnand %p3369_p13, %p3365_p8 }
  0xf8   : > { %3373 = shalt.err (!%p3370_p0)
}
  0xf9   : > { %2761 = dma.hbm_to_vmem [thread:$0]  (%p2858_p10), %s742_s7, 16, %s744_s16, [#allocation3]  }
  0xfa   : > { %s789_s0 = sshll.u32 %s3904_s25, 4  ;;  %s3853_s18 = smov [#allocation7]   ;;  %s4209_s0 = int_to_ptr.hbm [resolvable:$true] %s789_s0 }
  0xfb   : > { %s767_s8 = sshll.u32 %s3853_s18, 4  ;;  %s3388_s4 = sshra.s32 %s4200_s1, 4  ;;  %s768_s8 = int_to_ptr.vmem [resolvable:$true] %s767_s8  ;;  %s3389_s4 = int_to_ptr.hbm [resolvable:$true] %s3388_s4 }
  0xfc   : > { %s3390_s28 = scalar_lea.hbm %s3389_s4, 1  ;;  %s3394_s23 = scalar_lea.hbm %s3894_s17, 1 }
  0xfd   : > { %p3391_p1 = scmp.ne.s32.totalorder %s3389_s4, %s3390_s28  ;;  %p3395_p4 = scmp.lt.s32.totalorder %s3389_s4, %s3894_s17 }
  0xfe   : > { %p3396_p7 = scmp.lt.s32.totalorder %s3394_s23, %s3390_s28 }
  0xff   : > { %p3392_p2 = pnand %p3391_p1, %p2858_p10 }
 0x100   : > { %p3397_p8 = por %p3396_p7, %p3395_p4 }
 0x101   : > { %p3393_p3 = pneg %p3392_p2 }
 0x103   : > { %p3398_p11 = pnand %p3397_p8, %p3393_p3 }
 0x105   : > { %3401 = shalt.err (!%p3398_p11)
}
 0x106   : > { %s4683_s7 = sld [smem:[#allocation55_spill]]  ;;  %s3854_s26 = smov [#allocation10]  }
 0x107   : > { %2765 = dma.hbm_to_vmem [thread:$0]  (%p2858_p10), %s4200_s1, 16, %s768_s8, [#allocation6]  }
 0x108   : > { %s791_s18 = sshll.u32 %s3854_s26, 4  ;;  %s3416_s4 = sshra.s32 %s4209_s0, 4  ;;  %s792_s18 = int_to_ptr.vmem [resolvable:$true] %s791_s18  ;;  %s3417_s4 = int_to_ptr.hbm [resolvable:$true] %s3416_s4 }
 0x109   : > { %s3418_s28 = scalar_lea.hbm %s3417_s4, 1  ;;  %s3422_s23 = scalar_lea.hbm %s3904_s25, 1 }
 0x10a   : > { %p3419_p12 = scmp.ne.s32.totalorder %s3417_s4, %s3418_s28  ;;  %p3423_p1 = scmp.lt.s32.totalorder %s3417_s4, %s3904_s25 }
 0x10b   : > { %p3424_p2 = scmp.lt.s32.totalorder %s3422_s23, %s3418_s28 }
 0x10c   : > { %s4684_s16 = smov %s4683_s7  ;;  %s813_s6 = sshll.u32 %s4683_s7, 4  ;;  %s4220_s6 = int_to_ptr.hbm [resolvable:$true] %s813_s6 }
 0x10d   : > { %p3420_p13 = pnand %p3419_p12, %p2858_p10  ;;  %p3425_p3 = por %p3424_p2, %p3423_p1 }
 0x10f   : > { %p3421_p0 = pneg %p3420_p13 }
 0x111   : > { %p3426_p4 = pnand %p3425_p3, %p3421_p0 }
 0x113   : > { %3429 = shalt.err (!%p3426_p4)
}
 0x114   : > { %s4685_s1 = sld [smem:[#allocation58_spill]]  ;;  %s3855_s7 = smov [#allocation13]  }
 0x115   : > { %2769 = dma.hbm_to_vmem [thread:$0]  (%p2858_p10), %s4209_s0, 16, %s792_s18, [#allocation9]  }
 0x116   : > { %s815_s26 = sshll.u32 %s3855_s7, 4  ;;  %s3444_s4 = sshra.s32 %s4220_s6, 4  ;;  %s816_s26 = int_to_ptr.vmem [resolvable:$true] %s815_s26  ;;  %s3445_s4 = int_to_ptr.hbm [resolvable:$true] %s3444_s4 }
 0x117   : > { %s3446_s28 = scalar_lea.hbm %s3445_s4, 1  ;;  %s3450_s23 = scalar_lea.hbm %s4684_s16, 1 }
 0x118   : > { %p3447_p7 = scmp.ne.s32.totalorder %s3445_s4, %s3446_s28  ;;  %p3451_p12 = scmp.lt.s32.totalorder %s3445_s4, %s4684_s16 }
 0x119   : > { %p3452_p13 = scmp.lt.s32.totalorder %s3450_s23, %s3446_s28 }
 0x11a   : > { %s839_s8 = sshll.u32 %s4685_s1, 4  ;;  %p3448_p8 = pnand %p3447_p7, %p2858_p10  ;;  %s4231_s8 = int_to_ptr.hbm [resolvable:$true] %s839_s8 }
 0x11b   : > { %p3453_p0 = por %p3452_p13, %p3451_p12 }
 0x11c   : > { %p3449_p11 = pneg %p3448_p8 }
 0x11e   : > { %p3454_p1 = pnand %p3453_p0, %p3449_p11 }
 0x120   : > { %3457 = shalt.err (!%p3454_p1)
}
 0x121   : > { %s4686_s0 = sld [smem:[#allocation59_spill]]  ;;  %s3856_s7 = smov [#allocation16]  }
 0x122   : > { %2773 = dma.hbm_to_vmem [thread:$0]  (%p2858_p10), %s4220_s6, 16, %s816_s26, [#allocation12]  }
 0x123   : > { %s841_s9 = sshll.u32 %s3856_s7, 4  ;;  %s3472_s4 = sshra.s32 %s4231_s8, 4  ;;  %s842_s9 = int_to_ptr.vmem [resolvable:$true] %s841_s9  ;;  %s3473_s4 = int_to_ptr.hbm [resolvable:$true] %s3472_s4 }
 0x124   : > { %s3474_s28 = scalar_lea.hbm %s3473_s4, 16  ;;  %s3478_s23 = scalar_lea.hbm %s4685_s1, 16 }
 0x125   : > { %p3475_p2 = scmp.ne.s32.totalorder %s3473_s4, %s3474_s28  ;;  %p3479_p7 = scmp.lt.s32.totalorder %s3473_s4, %s4685_s1 }
 0x126   : > { %p3480_p8 = scmp.lt.s32.totalorder %s3478_s23, %s3474_s28 }
 0x127   : > { %s4687_s18 = smov %s4686_s0  ;;  %s867_s12 = sshll.u32 %s4686_s0, 4  ;;  %s4242_s12 = int_to_ptr.hbm [resolvable:$true] %s867_s12 }
 0x128   : > { %p3476_p3 = pnand %p3475_p2, %p2858_p10  ;;  %p3481_p11 = por %p3480_p8, %p3479_p7 }
 0x12a   : > { %p3477_p4 = pneg %p3476_p3 }
 0x12c   : > { %p3482_p12 = pnand %p3481_p11, %p3477_p4 }
 0x12e   : > { %3485 = shalt.err (!%p3482_p12)
}
 0x12f   : > { %s4688_s6 = sld [smem:[#allocation62_spill]]  ;;  %s3857_s0 = smov [#allocation19]  }
 0x130   : > { %2777 = dma.hbm_to_vmem [thread:$0]  (%p2858_p10), %s4231_s8, 256, %s842_s9, [#allocation15], %s4682_s11, %s4682_s11, %s4681_s22  }
 0x131   : > { %s869_s7 = sshll.u32 %s3857_s0, 4  ;;  %s3500_s4 = sshra.s32 %s4242_s12, 4  ;;  %s870_s7 = int_to_ptr.vmem [resolvable:$true] %s869_s7  ;;  %s3501_s4 = int_to_ptr.hbm [resolvable:$true] %s3500_s4 }
 0x132   : > { %s3502_s28 = scalar_lea.hbm %s3501_s4, 16  ;;  %s3506_s23 = scalar_lea.hbm %s4687_s18, 16 }
 0x133   : > { %p3503_p13 = scmp.ne.s32.totalorder %s3501_s4, %s3502_s28  ;;  %p3507_p2 = scmp.lt.s32.totalorder %s3501_s4, %s4687_s18 }
 0x134   : > { %p3508_p3 = scmp.lt.s32.totalorder %s3506_s23, %s3502_s28 }
 0x135   : > { %s899_s26 = sshll.u32 %s4688_s6, 4  ;;  %p3504_p0 = pnand %p3503_p13, %p2858_p10  ;;  %s4256_s26 = int_to_ptr.hbm [resolvable:$true] %s899_s26 }
 0x136   : > { %p3509_p4 = por %p3508_p3, %p3507_p2 }
 0x137   : > { %p3505_p1 = pneg %p3504_p0 }
 0x139   : > { %p3510_p7 = pnand %p3509_p4, %p3505_p1 }
 0x13b   : > { %3513 = shalt.err (!%p3510_p7)
}
 0x13c   : > { %s4689_s9 = sld [smem:[#allocation63_spill]]  ;;  %s3858_s8 = smov [#allocation22]  }
 0x13d   : > { %2781 = dma.hbm_to_vmem [thread:$0]  (%p2858_p10), %s4242_s12, 256, %s870_s7, [#allocation18], %s4682_s11, %s4682_s11, %s4681_s22  }
 0x13e   : > { %s901_s0 = sshll.u32 %s3858_s8, 4  ;;  %s3528_s4 = sshra.s32 %s4256_s26, 4  ;;  %s902_s0 = int_to_ptr.vmem [resolvable:$true] %s901_s0  ;;  %s3529_s4 = int_to_ptr.hbm [resolvable:$true] %s3528_s4 }
 0x13f   : > { %s3530_s28 = scalar_lea.hbm %s3529_s4, 1  ;;  %s3534_s23 = scalar_lea.hbm %s4688_s6, 1 }
 0x140   : > { %p3531_p8 = scmp.ne.s32.totalorder %s3529_s4, %s3530_s28  ;;  %p3535_p13 = scmp.lt.s32.totalorder %s3529_s4, %s4688_s6 }
 0x141   : > { %p3536_p0 = scmp.lt.s32.totalorder %s3534_s23, %s3530_s28 }
 0x142   : > { %s922_s1 = sshll.u32 %s4689_s9, 4  ;;  %p3532_p11 = pnand %p3531_p8, %p2858_p10  ;;  %s4270_s1 = int_to_ptr.hbm [resolvable:$true] %s922_s1 }
 0x143   : > { %p3537_p1 = por %p3536_p0, %p3535_p13 }
 0x144   : > { %p3533_p12 = pneg %p3532_p11 }
 0x146   : > { %p3538_p2 = pnand %p3537_p1, %p3533_p12 }
 0x148   : > { %3541 = shalt.err (!%p3538_p2)
}
 0x149   : > { %s4690_s12 = sld [smem:[#allocation66_spill]]  ;;  %s3859_s8 = smov [#allocation25]  }
 0x14a   : > { %2785 = dma.hbm_to_vmem [thread:$0]  (%p2858_p10), %s4256_s26, 16, %s902_s0, [#allocation21]  }
 0x14b   : > { %s924_s13 = sshll.u32 %s3859_s8, 4  ;;  %s3556_s4 = sshra.s32 %s4270_s1, 4  ;;  %s925_s13 = int_to_ptr.vmem [resolvable:$true] %s924_s13  ;;  %s3557_s4 = int_to_ptr.hbm [resolvable:$true] %s3556_s4 }
 0x14c   : > { %s3558_s28 = scalar_lea.hbm %s3557_s4, 16  ;;  %s3562_s23 = scalar_lea.hbm %s4689_s9, 16 }
 0x14d   : > { %p3559_p3 = scmp.ne.s32.totalorder %s3557_s4, %s3558_s28  ;;  %p3563_p8 = scmp.lt.s32.totalorder %s3557_s4, %s4689_s9 }
 0x14e   : > { %p3564_p11 = scmp.lt.s32.totalorder %s3562_s23, %s3558_s28 }
 0x14f   : > { %s954_s7 = sshll.u32 %s4690_s12, 4  ;;  %p3560_p4 = pnand %p3559_p3, %p2858_p10  ;;  %s4281_s7 = int_to_ptr.hbm [resolvable:$true] %s954_s7 }
 0x150   : > { %p3565_p12 = por %p3564_p11, %p3563_p8 }
 0x151   : > { %p3561_p7 = pneg %p3560_p4 }
 0x153   : > { %p3566_p13 = pnand %p3565_p12, %p3561_p7 }
 0x155   : > { %3569 = shalt.err (!%p3566_p13)
}
 0x156   : > { %s4691_s26 = smov 8   ;;  %s4692_s0 = smov 128  }
 0x157   : > { %s4693_s8 = sld [smem:[#allocation68_spill]]  ;;  %s3860_s6 = smov [#allocation28]  }
 0x158   : > { %2789 = dma.hbm_to_vmem [thread:$0]  (%p2858_p10), %s4270_s1, 256, %s925_s13, [#allocation24], %s4692_s0, %s4692_s0, %s4691_s26  }
 0x159   : > { %s956_s14 = sshll.u32 %s3860_s6, 4  ;;  %s3584_s4 = sshra.s32 %s4281_s7, 4  ;;  %s957_s14 = int_to_ptr.vmem [resolvable:$true] %s956_s14  ;;  %s3585_s4 = int_to_ptr.hbm [resolvable:$true] %s3584_s4 }
 0x15a   : > { %s3586_s28 = scalar_lea.hbm %s3585_s4, 1  ;;  %s3590_s23 = scalar_lea.hbm %s4690_s12, 1 }
 0x15b   : > { %p3587_p0 = scmp.ne.s32.totalorder %s3585_s4, %s3586_s28  ;;  %p3591_p3 = scmp.lt.s32.totalorder %s3585_s4, %s4690_s12 }
 0x15c   : > { %p3592_p4 = scmp.lt.s32.totalorder %s3590_s23, %s3586_s28 }
 0x15d   : > { %s977_s16 = sshll.u32 %s4693_s8, 4  ;;  %p3588_p1 = pnand %p3587_p0, %p2858_p10  ;;  %s4295_s16 = int_to_ptr.hbm [resolvable:$true] %s977_s16 }
 0x15e   : > { %p3593_p7 = por %p3592_p4, %p3591_p3 }
 0x15f   : > { %p3589_p2 = pneg %p3588_p1 }
 0x161   : > { %p3594_p8 = pnand %p3593_p7, %p3589_p2 }
 0x163   : > { %3597 = shalt.err (!%p3594_p8)
}
 0x164   : > { %s4694_s13 = sld [smem:[#allocation70_spill]]  ;;  %s3861_s6 = smov [#allocation31]  }
 0x165   : > { %2793 = dma.hbm_to_vmem [thread:$0]  (%p2858_p10), %s4281_s7, 16, %s957_s14, [#allocation27]  }
 0x166   : > { %s979_s26 = sshll.u32 %s3861_s6, 4  ;;  %s3612_s0 = sshra.s32 %s4295_s16, 4  ;;  %s980_s26 = int_to_ptr.vmem [resolvable:$true] %s979_s26  ;;  %s3613_s0 = int_to_ptr.hbm [resolvable:$true] %s3612_s0 }
 0x167   : > { %s3614_s4 = scalar_lea.hbm %s3613_s0, 16  ;;  %s3618_s28 = scalar_lea.hbm %s4693_s8, 16 }
 0x168   : > { %p3615_p11 = scmp.ne.s32.totalorder %s3613_s0, %s3614_s4  ;;  %p3619_p0 = scmp.lt.s32.totalorder %s3613_s0, %s4693_s8 }
 0x169   : > { %p3620_p1 = scmp.lt.s32.totalorder %s3618_s28, %s3614_s4 }
 0x16a   : > { %s1004_s1 = sshll.u32 %s4694_s13, 4  ;;  %p3616_p12 = pnand %p3615_p11, %p2858_p10  ;;  %s4306_s1 = int_to_ptr.hbm [resolvable:$true] %s1004_s1 }
 0x16b   : > { %p3621_p2 = por %p3620_p1, %p3619_p0 }
 0x16c   : > { %p3617_p13 = pneg %p3616_p12 }
 0x16e   : > { %p3622_p3 = pnand %p3621_p2, %p3617_p13 }
 0x170   : > { %3625 = shalt.err (!%p3622_p3)
}
 0x171   : > { %2797 = dma.hbm_to_vmem [thread:$0]  (%p2858_p10), %s4295_s16, 256, %s980_s26, [#allocation30], %s4682_s11, %s4682_s11, %s4681_s22  }
 0x172   : > { %s3862_s14 = smov [#allocation34]   ;;  %s1029_s23 = sshll.u32 %s4009_s20, 4  ;;  %s1030_s23 = int_to_ptr.hbm [resolvable:$true] %s1029_s23 }
 0x173   : > { %s1006_s7 = sshll.u32 %s3862_s14, 4  ;;  %s3640_s6 = sshra.s32 %s4306_s1, 4  ;;  %s1007_s7 = int_to_ptr.vmem [resolvable:$true] %s1006_s7  ;;  %s3641_s6 = int_to_ptr.hbm [resolvable:$true] %s3640_s6 }
 0x174   : > { %s3642_s0 = scalar_lea.hbm %s3641_s6, 1  ;;  %s3646_s4 = scalar_lea.hbm %s4694_s13, 1 }
 0x175   : > { %p3643_p4 = scmp.ne.s32.totalorder %s3641_s6, %s3642_s0  ;;  %p3647_p11 = scmp.lt.s32.totalorder %s3641_s6, %s4694_s13 }
 0x176   : > { %p3648_p12 = scmp.lt.s32.totalorder %s3646_s4, %s3642_s0 }
 0x177   : > { %p3644_p7 = pnand %p3643_p4, %p2858_p10 }
 0x178   : > { %p3649_p13 = por %p3648_p12, %p3647_p11 }
 0x179   : > { %p3645_p8 = pneg %p3644_p7 }
 0x17b   : > { %p3650_p0 = pnand %p3649_p13, %p3645_p8 }
 0x17d   : > { %3653 = shalt.err (!%p3650_p0)
}
 0x17e   : > { %2801 = dma.hbm_to_vmem [thread:$0]  (%p2858_p10), %s4306_s1, 16, %s1007_s7, [#allocation33]  }
 0x17f   : > { %s3863_s16 = smov [#allocation37]   ;;  %s3668_s28 = sshra.s32 %s1030_s23, 4  ;;  %s3669_s28 = int_to_ptr.hbm [resolvable:$true] %s3668_s28 }
 0x180   : > { %s1031_s26 = sshll.u32 %s3863_s16, 4  ;;  %s3670_s14 = scalar_lea.hbm %s3669_s28, 16  ;;  %s1032_s26 = int_to_ptr.vmem [resolvable:$true] %s1031_s26 }
 0x181   : > { %p3671_p1 = scmp.ne.s32.totalorder %s3669_s28, %s3670_s14  ;;  %s3674_s6 = scalar_lea.hbm %s4009_s20, 16 }
 0x182   : > { %p3675_p4 = scmp.lt.s32.totalorder %s3669_s28, %s4009_s20  ;;  %p3676_p7 = scmp.lt.s32.totalorder %s3674_s6, %s3670_s14 }
 0x183   : > { %p3672_p2 = pnand %p3671_p1, %p2858_p10 }
 0x184   : > { %p3677_p8 = por %p3676_p7, %p3675_p4 }
 0x185   : > { %p3673_p3 = pneg %p3672_p2 }
 0x187   : > { %p3678_p11 = pnand %p3677_p8, %p3673_p3 }
 0x189   : > { %3681 = shalt.err (!%p3678_p11)
}
 0x18a   : > { %2805 = dma.hbm_to_vmem [thread:$0]  (%p2858_p10), %s1030_s23, 256, %s1032_s26, [#allocation36], %s4682_s11, %s4682_s11, %s4681_s22  }
 0x18b PF: > { %1062 = sbr.rel (%p4074_p9) target bundleno = 2567 (0xa07), region = 136  ;;  %p2881_p12 = scmp.eq.s32.totalorder (!%p4074_p9), %s4047_s15, 0 }
 0x190   : > { %3741 = dma.done.wait (%p2881_p12), [#allocation3], 16  }
 0x191   : > { %3743 = vsyncadd (%p2881_p12), [#allocation3], 4294967280 }
 0x192   : > { %3745 = dma.done.wait (%p2881_p12), [#allocation6], 32  }
 0x193   : > { %3747 = vsyncadd (%p2881_p12), [#allocation6], 4294967264 }
 0x194   : > { %3749 = dma.done.wait (%p2881_p12), [#allocation9], 32  }
 0x195   : > { %3751 = vsyncadd (%p2881_p12), [#allocation9], 4294967264 }
 0x196   : > { %3753 = dma.done.wait (%p2881_p12), [#allocation12], 32  }
 0x197   : > { %3755 = vsyncadd (%p2881_p12), [#allocation12], 4294967264 }
 0x198   : > { %3757 = dma.done.wait (%p2881_p12), [#allocation15], 272  }
 0x199   : > { %3759 = vsyncadd (%p2881_p12), [#allocation15], 4294967024 }
 0x19a   : > { %3761 = dma.done.wait (%p2881_p12), [#allocation18], 512  }
 0x19b   : > { %3763 = vsyncadd (%p2881_p12), [#allocation18], 4294966784 }
 0x19c   : > { %3765 = dma.done.wait (%p2881_p12), [#allocation21], 272  }
 0x19d   : > { %3767 = vsyncadd (%p2881_p12), [#allocation21], 4294967024 }
 0x19e   : > { %3769 = dma.done.wait (%p2881_p12), [#allocation24], 272  }
 0x19f   : > { %3771 = vsyncadd (%p2881_p12), [#allocation24], 4294967024 }
 0x1a0   : > { %3773 = dma.done.wait (%p2881_p12), [#allocation27], 272  }
 0x1a1   : > { %3775 = vsyncadd (%p2881_p12), [#allocation27], 4294967024 }
 0x1a2   : > { %3777 = dma.done.wait (%p2881_p12), [#allocation30], 272  }
 0x1a3   : > { %3779 = vsyncadd (%p2881_p12), [#allocation30], 4294967024 }
 0x1a4   : > { %3781 = dma.done.wait (%p2881_p12), [#allocation33], 32  }
 0x1a5   : > { %3783 = vsyncadd (%p2881_p12), [#allocation33], 4294967264 }
 0x1a6   : > { %3785 = dma.done.wait (%p2881_p12), [#allocation36], 512  }
 0x1a7   : > { %3787 = vsyncadd (%p2881_p12), [#allocation36], 4294966784  ;;  %s4695_s2 = sld [smem:[#allocation52_spill]]  ;;  %s2635_s22 = sshll.u32 %s4047_s15, 1  ;;  %vm1269_vm0 = vcmask 261120   ;;  %v3864_v4 = vmov 32.0   ;;  %v1335_v43 = vlaneseq }
 0x1a8   : > { %p1250_p9 = scmp.lt.s32.totalorder %s2635_s22, 3  ;;  %3020 = vrcp.f32 %v3864_v4  ;;  %s4696_s7 = sld [smem:[#allocation57_spill]]  ;;  %v2742_v25 = vld [vmem:[#allocation16 + $0x8] sm:$0xff]  ;;  %v2744_v26 = vld [vmem:[#allocation17 + $0x8] sm:$0xff]  ;;  %v2741_v29 = vld [vmem:[#allocation16] sm:$0xff]  ;;  %vm1592_vm11 = vcmask 130048  }
 0x1a9   : > { %v2746_v27 = vld [vmem:[#allocation19 + $0x8] sm:$0xff]  ;;  %1489 = vmatpush.bf16.msra.mxu1 %v2742_v25  ;;  %1523 = vmatpush.bf16.msra.mxu2 %v2744_v26  ;;  %v2743_v30 = vld [vmem:[#allocation17] sm:$0xff]  ;;  %v2745_v31 = vld [vmem:[#allocation19] sm:$0xff]  ;;  %v4410_v47 = vshrl.u32 %v1335_v43, 7  ;;  %vm1660_vm12 = vcmask 1043456   ;;  %s3865_s0 = smov 112  }
 0x1aa   : > { %s4720_s22 = smov (!%p1250_p9, %s2635_s22), 3  ;;  %1557 = vmatpush.bf16.msra.mxu3 %v2746_v27  ;;  %v3005_v48 = vld [vmem:[#allocation2] ss:$0 sm:$0xff]  ;;  %v3006_v51 = vld [vmem:[#allocation5] ss:$0 sm:$0xff]  ;;  %s4702_s4 = sld [smem:[#allocation65_spill]] }
 0x1ab   : > { %s2636_s11 = sshll.u32 %s4720_s22, 3  ;;  %v1340_v53 = vadd.s32 8, %v4410_v47  ;;  %v1267_v55 = vld [vmem:[#allocation13] sm:$0x1]  ;;  %v1265_v56 = vld [vmem:[#allocation10] sm:$0x1] }
 0x1ac   : > { %v1266_v58 = vld [vmem:[#allocation11] sm:$0x1]  ;;  %v1268_v59 = vld [vmem:[#allocation14] sm:$0x1]  ;;  %v1345_v61 = vand.u32 7, %v4410_v47  ;;  %v1408_v63 = vsub.f32 1.0, %v1267_v55 }
 0x1ad   : > { %s1253_s1 = scalar_lea.vmem %s4695_s2, %s2636_s11  ;;  %1490 = vmatpush.bf16.msra.mxu1 %v2741_v29  ;;  %1524 = vmatpush.bf16.msra.mxu2 %v2743_v30  ;;  %v1352_v62 = vand.u32 7, %v1340_v53  ;;  %vm1337_vm8 = vcmp.lt.s32.totalorder %v4410_v47, 1  ;;  %v1263_v55 = vld [vmem:[#allocation26] sm:$0xff]  ;;  %vm1656_vm13 = vcmask 64512   ;;  %s3866_s16 = smov 16  }
 0x1ae   : > { %v4390_v0 = vld [vmem:[%s1253_s1] sm:$0xff]  ;;  %v4394_v2 = vld [vmem:[%s1253_s1 + $0x8] sm:$0xff]  ;;  %v3021_v5 = vpop.eup %3020  ;;  %s4697_s23 = smov %s4696_s7  ;;  %1558 = vmatpush.bf16.msra.mxu3 %v2745_v31  ;;  %vm4415_vm9 = vcmp.eq.s32.totalorder %v1345_v61, 0  ;;  %s4707_s26 = sld [smem:[#allocation61_spill]] }
 0x1af   : > { %v1270_v1 = vsel %vm1269_vm0, %v4390_v0, 0.0  ;;  %v1273_v3 = vsel %vm1269_vm0, %v4394_v2, 0.0  ;;  %v1277_v6 = vmul.f32 32.0, %v3021_v5  ;;  %vm1281_vm1 = vweird.f32 %v3021_v5  ;;  %v2740_v24 = vld [vmem:[%s4696_s7 + $0x8] sm:$0xff]  ;;  %v2739_v28 = vld [vmem:[%s4697_s23] sm:$0xff]  ;;  %s4708_s5 = sld [smem:[#allocation71_spill]] }
 0x1b0   : > { %1271 = vadd.xlane.f32.xlu0 %v1270_v1  ;;  %1455 = vmatpush.bf16.msra.mxu0 %v2740_v24  ;;  %v1382_v1 = vsub.f32 1.0, %v1265_v56  ;;  %vm4419_vm10 = vcmp.eq.s32.totalorder %v1352_v62, 0  ;;  %v1264_v62 = vld [vmem:[#allocation26 + $0x8] sm:$0xff]  ;;  %s1246_s28 = sand.u32 1, %s3798_s10   ;;  %s2759_s6 = sshll.u32 %s4047_s15, 4 }
 0x1b1   : > { %v1278_v7 = vsub.f32 1.0, %v1277_v6  ;;  %v1395_v6 = vsub.f32 1.0, %v1266_v58  ;;  %s2634_s14 = sshll.u32 %s1246_s28, 4  ;;  %s2268_s2 = scalar_lea.hbm %s4024_s3, %s2759_s6 }
 0x1b2   : > { %s1248_s22 = scalar_lea.vmem [#allocation38], %s2634_s14  ;;  %s2271_s7 = sshll.u32 %s2268_s2, 4  ;;  %s2272_s7 = int_to_ptr.hbm [resolvable:$true] %s2271_s7 }
 0x1b3   : > { %v1279_v8 = vmul.f32 %v3021_v5, %v1278_v7  ;;  %v1421_v7 = vsub.f32 1.0, %v1268_v59  ;;  %s2269_s1 = sshll.u32 %s1248_s22, 4  ;;  %s2257_s15 = scalar_lea.sflag [#allocation4], %s1246_s28  ;;  %s2270_s1 = int_to_ptr.vmem [resolvable:$true] %s2269_s1 }
 0x1b4   : > { %1456 = vmatpush.bf16.msra.mxu0 %v2739_v28 }
 0x1b5   : > { %v1280_v9 = vadd.f32 %v3021_v5, %v1279_v8  ;;  %v3009_v8 = vld [vmem:[#allocation10] ss:$0 sm:$0xff] }
 0x1b7   : > { %v4398_v10 = vsel %vm1281_vm1, %v3021_v5, %v1280_v9  ;;  %v3008_v5 = vld [vmem:[#allocation13] ss:$0 sm:$0xff]  ;;  %v3010_v9 = vld [vmem:[#allocation11] ss:$0 sm:$0xff] }
 0x1b8   : > { %1274 = vadd.xlane.f32.xlu0 %v1273_v3 }
 0x223   : > { %v1272_v11 = vpop.xlane.xlu0 %1271 }
 0x224   : > { %v1283_v12 = vmul.f32 %v4398_v10, %v1272_v11  ;;  %v3011_v11 = vld [vmem:[#allocation14] ss:$0 sm:$0xff] }
 0x226   : > { %v1285_v13 = vsub.f32 %v4390_v0, %v1283_v12 }
 0x228   : > { %v1287_v14 = vmul.f32 %v1285_v13, %v1285_v13 }
 0x22a   : > { %v1289_v15 = vsel %vm1269_vm0, %v1287_v14, 0.0  ;;  %v2756_v14 = vld [vmem:[%s4014_s19 + $0x18] sm:$0xff] }
 0x22b   : > { %1290 = vadd.xlane.f32.xlu1 %v1289_v15  ;;  %v1275_v16 = vpop.xlane.xlu0 %1274  ;;  %v3007_v15 = vld [vmem:[#allocation29] ss:$0 sm:$0xff] }
 0x22c   : > { %v1284_v17 = vmul.f32 %v4398_v10, %v1275_v16  ;;  %v1410_v16 = vperm.slane %v1408_v63, 0 }
 0x22e   : > { %v1286_v18 = vsub.f32 %v4394_v2, %v1284_v17  ;;  %v1384_v17 = vperm.slane %v1382_v1, 0 }
 0x230   : > { %v1288_v19 = vmul.f32 %v1286_v18, %v1286_v18 }
 0x232   : > { %v1292_v20 = vsel %vm1269_vm0, %v1288_v19, 0.0 }
 0x233   : > { %1293 = vadd.xlane.f32.xlu1 %v1292_v20  ;;  %v1397_v20 = vperm.slane %v1395_v6, 0 }
 0x29e   : > { %v1291_v21 = vpop.xlane.xlu1 %1290 }
 0x29f   : > { %v1295_v22 = vmul.f32 %v1291_v21, %v4398_v10  ;;  %v1423_v21 = vperm.slane %v1421_v7, 0 }
 0x2a1   : > { %v1297_v23 = vadd.f32 1e-05, %v1295_v22 }
 0x2a3   : > { %3022 = vrsqrt.f32 %v1297_v23  ;;  %vm1305_vm3 = vweird.f32 %v1297_v23 }
 0x2a6   : > { %v1294_v32 = vpop.xlane.xlu1 %1293 }
 0x2a7   : > { %v1296_v33 = vmul.f32 %v1294_v32, %v4398_v10 }
 0x2a9   : > { %v3023_v34 = vpop.eup %3022  ;;  %v1298_v35 = vadd.f32 1e-05, %v1296_v33 }
 0x2aa   : > { %v1300_v36 = vmul.f32 %v3023_v34, %v1297_v23  ;;  %vm1306_vm2 = vweird.f32 %v3023_v34 }
 0x2ab   : > { %3024 = vrsqrt.f32 %v1298_v35  ;;  %vm1307_vm4 = vmor %vm1305_vm3, %vm1306_vm2  ;;  %vm1315_vm6 = vweird.f32 %v1298_v35 }
 0x2ac   : > { %v1301_v37 = vmul.f32 %v3023_v34, %v1300_v36 }
 0x2ae   : > { %v1302_v38 = vmul.f32 0.5, %v1301_v37 }
 0x2b0   : > { %v1303_v39 = vsub.f32 1.5, %v1302_v38 }
 0x2b1   : > { %v3025_v40 = vpop.eup %3024 }
 0x2b2   : > { %v1304_v41 = vmul.f32 %v3023_v34, %v1303_v39  ;;  %v1310_v42 = vmul.f32 %v3025_v40, %v1298_v35  ;;  %vm1316_vm5 = vweird.f32 %v3025_v40 }
 0x2b3   : > { %vm1317_vm7 = vmor %vm1315_vm6, %vm1316_vm5 }
 0x2b4   : > { %v1308_v44 = vsel %vm1307_vm4, %v3023_v34, %v1304_v41  ;;  %v1311_v45 = vmul.f32 %v3025_v40, %v1310_v42 }
 0x2b5   : > { %v1319_v49 = vmul.f32 %v1308_v44, %v1285_v13 }
 0x2b6   : > { %v1312_v46 = vmul.f32 0.5, %v1311_v45 }
 0x2b7   : > { %v1325_v54 = vmul.f32 %v3005_v48, %v1319_v49 }
 0x2b8   : > { %v1313_v50 = vsub.f32 1.5, %v1312_v46 }
 0x2b9   : > { %v1331_v3 = vadd.f32 %v3006_v51, %v1325_v54 }
 0x2ba   : > { %v1314_v52 = vmul.f32 %v3025_v40, %v1313_v50 }
 0x2bb   : > { %v1406_v22 = vmul.f32 %v3008_v5, %v1331_v3  ;;  %v1380_v23 = vmul.f32 %v3009_v8, %v1331_v3  ;;  %v1393_v24 = vmul.f32 %v3010_v9, %v1331_v3  ;;  %v1419_v25 = vmul.f32 %v3011_v11, %v1331_v3 }
 0x2bc   : > { %v1318_v57 = vsel %vm1317_vm7, %v3025_v40, %v1314_v52 }
 0x2bd   : > { %v1320_v60 = vmul.f32 %v1318_v57, %v1286_v18  ;;  %v1333_v18 = vrot.slane %v1331_v3, 7 }
 0x2bf   : > { %v1326_v4 = vmul.f32 %v3005_v48, %v1320_v60 }
 0x2c1   : > { %v1332_v12 = vadd.f32 %v3006_v51, %v1326_v4 }
 0x2c3   : > { %v1334_v19 = vrot.slane %v1332_v12, 7  ;;  %v1407_v28 = vmul.f32 %v3008_v5, %v1332_v12  ;;  %v1381_v29 = vmul.f32 %v3009_v8, %v1332_v12  ;;  %v1394_v32 = vmul.f32 %v3010_v9, %v1332_v12 }
 0x2c4   : > { %v1420_v33 = vmul.f32 %v3011_v11, %v1332_v12 }
 0x2c5   : > { %v1338_v26 = vsel %vm1337_vm8, %v1333_v18, %v1334_v19  ;;  %v1339_v27 = vsel %vm1337_vm8, %v1334_v19, %v1333_v18 }
 0x2c6   : > { %v1375_v30 = vsel %vm4415_vm9, %v3007_v15, %v1339_v27  ;;  %v1376_v31 = vsel %vm4419_vm10, %v3007_v15, %v1338_v26 }
 0x2c7   : > { %v1412_v34 = vmul.f32 %v1410_v16, %v1375_v30  ;;  %v1413_v35 = vmul.f32 %v1410_v16, %v1376_v31  ;;  %v1386_v36 = vmul.f32 %v1384_v17, %v1375_v30  ;;  %v1387_v37 = vmul.f32 %v1384_v17, %v1376_v31  ;;  %v2748_v16 = vld [vmem:[#allocation31 + $0x8] sm:$0xff] }
 0x2c8   : > { %v1399_v38 = vmul.f32 %v1397_v20, %v1375_v30  ;;  %v1400_v39 = vmul.f32 %v1397_v20, %v1376_v31  ;;  %v1425_v40 = vmul.f32 %v1423_v21, %v1375_v30  ;;  %v1426_v41 = vmul.f32 %v1423_v21, %v1376_v31 }
 0x2c9   : > { %v1414_v42 = vadd.f32 %v1412_v34, %v1406_v22  ;;  %v1415_v43 = vadd.f32 %v1413_v35, %v1407_v28  ;;  %v1388_v44 = vadd.f32 %v1386_v36, %v1380_v23  ;;  %v1389_v45 = vadd.f32 %v1387_v37, %v1381_v29  ;;  %v2747_v23 = vld [vmem:[#allocation31] sm:$0xff] }
 0x2ca   : > { %v1401_v46 = vadd.f32 %v1399_v38, %v1393_v24  ;;  %v1402_v48 = vadd.f32 %v1400_v39, %v1394_v32  ;;  %v1427_v49 = vadd.f32 %v1425_v40, %v1419_v25  ;;  %v1428_v50 = vadd.f32 %v1426_v41, %v1420_v33  ;;  %v3012_v25 = vld [vmem:[#allocation23] ss:$0 sm:$0xff]  ;;  %v1262_v34 = vld [vmem:[#allocation25 + $0x8] sm:$0xff]  ;;  %v1261_v35 = vld [vmem:[#allocation25] sm:$0xff] }
 0x2cb   : > { %v1429_v51 = vpack.c.bf16 %v1415_v43, %v1414_v42  ;;  %v1463_v52 = vpack.c.bf16 %v1389_v45, %v1388_v44 }
 0x2cc   : > { %v1497_v53 = vpack.c.bf16 %v1402_v48, %v1401_v46  ;;  %v1531_v54 = vpack.c.bf16 %v1428_v50, %v1427_v49 }
 0x2cd   : > { %2645 = vmatmul.msk.bf16.vlgmr.msra.gmra.mxu0 %vm1269_vm0, %v1429_v51  ;;  %2654 = vmatmul.msk.bf16.vlgmr.msra.gmra.mxu1 %vm1269_vm0, %v1463_v52 }
 0x2ce   : > { %2663 = vmatmul.msk.bf16.vlgmr.msra.gmra.mxu2 %vm1269_vm0, %v1497_v53  ;;  %2672 = vmatmul.msk.bf16.vlgmr.msra.gmra.mxu3 %vm1269_vm0, %v1531_v54  ;;  %v1260_v54 = vld [vmem:[%s4702_s4] sm:$0xff] }
 0x34a   : > { %v1458_v56 = vpop.f32.mrf.mxu0  ;;  %v1492_v57 = vpop.f32.mrf.mxu1 }
 0x34b   : > { %v1629_v58 = vmul.f32 %v1492_v57, %v1263_v55  ;;  %v1627_v63 = vpack.c.bf16 %v1458_v56, %v1458_v56  ;;  %v1588_v33 = vmul.f32 %v3012_v25, %v1458_v56  ;;  %v1577_v38 = vmul.f32 %v1458_v56, %v1261_v35 }
 0x34d   : > { %v1631_v59 = vpack.c.bf16 %v1629_v58, %v1629_v58  ;;  %v1678_v15 = vunpack.c.l.b16 %v1627_v63  ;;  %v1590_v36 = vmul.f32 %v1588_v33, %v1492_v57 }
 0x34f   : > { %v1639_v60 = vsel %vm1592_vm11, %v1631_v59, 0  ;;  %v1683_v61 = vunpack.c.l.b16 %v1631_v59  ;;  %v1679_v21 = vpack.c.b16 %v1678_v15, %v1678_v15  ;;  %v1593_v41 = vsel %vm1592_vm11, %v1590_v36, 0.0 }
 0x350   : > { %1648 = vmatpush.bf16.xpose.msrb.mxu0 %v1639_v60 }
 0x351   : > { %v4436_v1 = vpop.f32.mrf.mxu2  ;;  %v1684_v3 = vpack.c.b16 %v1683_v61, %v1683_v61 }
 0x352   : > { %v1633_v4 = vpack.c.bf16 %v4436_v1, %v4436_v1  ;;  %v1460_v5 = vpop.f32.mrf.mxu0  ;;  %v1494_v6 = vpop.f32.mrf.mxu1 }
 0x353   : > { %v1628_v7 = vpack.c.bf16 %v1460_v5, %v1460_v5  ;;  %v1630_v8 = vmul.f32 %v1494_v6, %v1264_v62  ;;  %1685 = vrot.lane.b32.xlu2 %v1684_v3, %s3865_s0  ;;  %v1589_v28 = vmul.f32 %v3012_v25, %v1460_v5  ;;  %v1578_v37 = vmul.f32 %v1460_v5, %v1262_v34 }
 0x354   : > { %v1662_v9 = vsel %vm1660_vm12, %v1633_v4, 0  ;;  %v1709_v27 = vunpack.c.l.b16 %v1633_v4 }
 0x355   : > { %v1632_v11 = vpack.c.bf16 %v1630_v8, %v1630_v8  ;;  %1671 = vmatpush.bf16.msrb.mxu1 %v1662_v9  ;;  %v1778_v12 = vunpack.c.l.b16 %v1628_v7  ;;  %v1591_v29 = vmul.f32 %v1589_v28, %v1494_v6  ;;  %v1579_v39 = vpack.c.bf16 %v1578_v37, %v1577_v38 }
 0x356   : > { %v1710_v30 = vpack.c.b16 %v1709_v27, %v1709_v27  ;;  %v1259_v27 = vld [vmem:[#allocation28] sm:$0x1]  ;;  %v3867_v28 = vmov 0  }
 0x357   : > { %v1783_v17 = vunpack.c.l.b16 %v1632_v11  ;;  %2673 = vmatmul.msk.bf16.vlgmr.msrb.gmra.mxu0 %vm1592_vm11, %v1627_v63  ;;  %v1741_v18 = vsel %vm1592_vm11, %v1632_v11, 0  ;;  %v1779_v19 = vpack.c.b16 %v1778_v12, %v1778_v12  ;;  %v1596_v40 = vsel %vm1592_vm11, %v1591_v29, 0.0 }
 0x358   : > { %1750 = vmatpush.bf16.xpose.msra.mxu0 %v1741_v18  ;;  %vm1619_vm14 = vcmp.eq.s32.totalorder %v1259_v27, 1  ;;  %vm1599_vm15 = vcmp.eq.s32.totalorder %v1259_v27, 0 }
 0x359   : > { %v4444_v20 = vpop.f32.mrf.mxu2  ;;  %1780 = vrot.lane.b32.xlu1 %v1779_v19, %s3865_s0  ;;  %v1784_v22 = vpack.c.b16 %v1783_v17, %v1783_v17 }
 0x35a   : > { %v1634_v24 = vpack.c.bf16 %v4444_v20, %v4444_v20 }
 0x35b   : > { %1680 = vrot.lane.b32.xlu2 %v1679_v21, %s3865_s0  ;;  %1785 = vrot.lane.b32.xlu0 %v1784_v22, %s3865_s0  ;;  %v4473_v21 = vpop.f32.mrf.mxu3 }
 0x35c   : > { %v1762_v26 = vsel %vm1660_vm12, %v1634_v24, 0  ;;  %v1809_v31 = vunpack.c.l.b16 %v1634_v24 }
 0x35d   : > { %1771 = vmatpush.bf16.msra.mxu1 %v1762_v26 }
 0x35e   : > { %v1810_v32 = vpack.c.b16 %v1809_v31, %v1809_v31 }
 0x360   : > { %1858 = vmatpush.bf16.msrb.mxu0 %v2748_v16 }
 0x363   : > { %1711 = vrot.lane.b32.xlu2 %v1710_v30, %s3865_s0  ;;  %1609 = vrot.lane.b32.xlu0 %v1591_v29, %s3865_s0  ;;  %v4475_v22 = vpop.f32.mrf.mxu3  ;;  %v1620_v29 = vsel %vm1619_vm14, 1, %v3867_v28  ;;  %v1600_v30 = vsel %vm1599_vm15, 1, %v3867_v28 }
 0x364   : > { %1859 = vmatpush.bf16.msrb.mxu0 %v2747_v23  ;;  %v1601_v33 = vperm.slane %v1600_v30, 0 }
 0x366   : > { %vm4481_vm2 = vcmp.eq.s32.totalorder %v1601_v33, 1 }
 0x367   : > { %2677 = vmatmul.msk.bf16.vlgmr.msra.gmra.mxu0 %vm1592_vm11, %v1628_v7 }
 0x36b   : > { %1811 = vrot.lane.b32.xlu2 %v1810_v32, %s3865_s0  ;;  %v1621_v32 = vperm.slane %v1620_v29, 0 }
 0x36d   : > { %vm4477_vm1 = vcmp.eq.s32.totalorder %v1621_v32, 1 }
 0x373   : > { %1607 = vrot.lane.b32.xlu2 %v1590_v36, %s3865_s0 }
 0x377   : > { %2689 = vmatmul.msk.bf16.vlgmr.msrb.gmra.mxu0 %vm1269_vm0, %v1579_v39 }
 0x383   : > { %1597 = vadd.xlane.f32.xlu1 %v1596_v40 }
 0x39c   : > { %1594 = vadd.xlane.f32.xlu2 %v1593_v41 }
 0x3ad   : > { %v1686_v42 = vpop.permute.xlu2 %1685 }
 0x3ae   : > { %v1691_v43 = vsel %vm1592_vm11, %v1686_v42, 0 }
 0x3af   : > { %1700 = vmatpush.bf16.xpose.msrb.mxu2 %v1691_v43 }
 0x3b5   : > { %v1681_v44 = vpop.permute.xlu2 %1680 }
 0x3b6   : > { %2675 = vmatmul.msk.bf16.vlgmr.msrb.gmra.mxu2 %vm1592_vm11, %v1681_v44 }
 0x3bd   : > { %v1712_v45 = vpop.permute.xlu2 %1711 }
 0x3be   : > { %v1717_v46 = vsel %vm1660_vm12, %v1712_v45, 0 }
 0x3bf   : > { %1726 = vmatpush.bf16.msrb.mxu3 %v1717_v46 }
 0x3c5   : > { %v1812_v48 = vpop.permute.xlu2 %1811 }
 0x3c6   : > { %v1817_v49 = vsel %vm1660_vm12, %v1812_v48, 0 }
 0x3c7   : > { %1826 = vmatpush.bf16.msra.mxu3 %v1817_v49 }
 0x3cb   : > { %v1781_v56 = vpop.permute.xlu1 %1780 }
 0x3cd   : > { %v1608_v50 = vpop.permute.xlu2 %1607  ;;  %v1786_v51 = vpop.permute.xlu0 %1785 }
 0x3ce   : > { %v1791_v52 = vsel %vm1592_vm11, %v1786_v51, 0  ;;  %v1613_v53 = vsel %vm1592_vm11, %v1608_v50, 0.0 }
 0x3cf   : > { %1800 = vmatpush.bf16.xpose.msra.mxu2 %v1791_v52  ;;  %1614 = vadd.xlane.f32.xlu0 %v1613_v53 }
 0x3d4   : > { %v1650_v55 = vpop.f32.mrf.mxu0 }
 0x3d5   : > { %v1654_v57 = vmul.f32 %v1650_v55, %v1260_v54  ;;  %v1610_v58 = vpop.permute.xlu0 %1609 }
 0x3d6   : > { %2679 = vmatmul.msk.bf16.vlgmr.msra.gmra.mxu2 %vm1592_vm11, %v1781_v56  ;;  %v1616_v59 = vsel %vm1592_vm11, %v1610_v58, 0.0 }
 0x3d7   : > { %v1655_v60 = vpack.c.bf16 %v1654_v57, %v1654_v57  ;;  %1617 = vadd.xlane.f32.xlu2 %v1616_v59 }
 0x3d9   : > { %2674 = vmatmul.msk.bf16.vlgmr.msrb.gmra.mxu1 %vm1656_vm13, %v1655_v60 }
 0x3dc   : > { %v1652_v61 = vpop.f32.mrf.mxu0 }
 0x3e4   : > { %v1752_v62 = vpop.f32.mrf.mxu0 }
 0x3e5   : > { %v1756_v63 = vmul.f32 %v1752_v62, %v1260_v54 }
 0x3e7   : > { %v1757_v3 = vpack.c.bf16 %v1756_v63, %v1756_v63 }
 0x3e9   : > { %2678 = vmatmul.msk.bf16.vlgmr.msra.gmra.mxu1 %vm1656_vm13, %v1757_v3 }
 0x3ec   : > { %v1754_v4 = vpop.f32.mrf.mxu0 }
 0x3f4   : > { %v1861_v39 = vpop.f32.mrf.mxu0 }
 0x3f6   : > { %v1598_v34 = vpop.xlane.xlu1 %1597 }
 0x3f7   : > { %v1604_v42 = vsel %vm4481_vm2, %v1598_v34, 0.0 }
 0x3fc   : > { %v1863_v51 = vpop.f32.mrf.mxu0 }
 0x40f   : > { %v1595_v31 = vpop.xlane.xlu2 %1594 }
 0x410   : > { %v1603_v38 = vsel %vm4481_vm2, %v1595_v31, 0.0 }
 0x439   : > { %v1702_v5 = vpop.f32.mrf.mxu2 }
 0x43a   : > { %v1706_v6 = vmul.f32 %v1702_v5, %v1260_v54  ;;  %v3868_v5 = vmov 16.0  }
 0x43b   : > { %3026 = vrcp.f32 %v3868_v5 }
 0x43c   : > { %v1707_v7 = vpack.c.bf16 %v1706_v6, %v1706_v6 }
 0x43e   : > { %2676 = vmatmul.msk.bf16.vlgmr.msrb.gmra.mxu3 %vm1656_vm13, %v1707_v7 }
 0x43f   : > { %2196 = vmatpush.bf16.msrb.mxu3 %v2756_v14 }
 0x441   : > { %v1704_v8 = vpop.f32.mrf.mxu2  ;;  %v3027_v6 = vpop.eup %3026 }
 0x442   : > { %v1615_v36 = vpop.xlane.xlu0 %1614  ;;  %v1879_v7 = vmul.f32 16.0, %v3027_v6  ;;  %vm1883_vm3 = vweird.f32 %v3027_v6 }
 0x443   : > { %v1623_v40 = vsel %vm4477_vm1, %v1615_v36, %v1603_v38 }
 0x444   : > { %v1625_v43 = vmul.f32 %v1623_v40, %v4436_v1  ;;  %v1880_v8 = vsub.f32 1.0, %v1879_v7 }
 0x446   : > { %v1862_v49 = vadd.f32 %v1861_v39, %v1625_v43 }
 0x44a   : > { %v1618_v41 = vpop.xlane.xlu2 %1617 }
 0x44b   : > { %v1624_v45 = vsel %vm4477_vm1, %v1618_v41, %v1604_v42 }
 0x44c   : > { %v1626_v48 = vmul.f32 %v1624_v45, %v4444_v20 }
 0x44e   : > { %v1864_v53 = vadd.f32 %v1863_v51, %v1626_v48 }
 0x456   : > { %v1673_v9 = vpop.f32.mrf.mxu1 }
 0x459   : > { %v1802_v11 = vpop.f32.mrf.mxu2 }
 0x45a   : > { %v1806_v12 = vmul.f32 %v1802_v11, %v1260_v54 }
 0x45c   : > { %v1807_v15 = vpack.c.bf16 %v1806_v12, %v1806_v12 }
 0x45e   : > { %v1675_v16 = vpop.f32.mrf.mxu1  ;;  %2680 = vmatmul.msk.bf16.vlgmr.msra.gmra.mxu3 %vm1656_vm13, %v1807_v15 }
 0x461   : > { %v1804_v17 = vpop.f32.mrf.mxu2 }
 0x466   : > { %v1773_v18 = vpop.f32.mrf.mxu1 }
 0x46e   : > { %v1775_v19 = vpop.f32.mrf.mxu1 }
 0x4c1   : > { %v1728_v23 = vpop.f32.mrf.mxu3 }
 0x4c2   : > { %1733 = vrot.lane.b32.xlu1 %v1728_v23, %s3866_s16 }
 0x4c9   : > { %v1730_v24 = vpop.f32.mrf.mxu3 }
 0x4e1   : > { %v1828_v25 = vpop.f32.mrf.mxu3 }
 0x4e2   : > { %1833 = vrot.lane.b32.xlu0 %v1828_v25, %s3866_s16  ;;  %s3716_s16 = scalar_lea.hbm %s4024_s3, 32 }
 0x4e9   : > { %v1830_v26 = vpop.f32.mrf.mxu3 }
 0x534   : > { %v1734_v44 = vpop.permute.xlu1 %1733 }
 0x535   : > { %v1736_v46 = vsel %vm1592_vm11, %v1673_v9, %v1734_v44  ;;  %v1881_v9 = vmul.f32 %v3027_v6, %v1880_v8 }
 0x536   : > { %v1866_v50 = vadd.f32 %v1862_v49, %v1736_v46 }
 0x537   : > { %v1882_v11 = vadd.f32 %v3027_v6, %v1881_v9 }
 0x538   : > { %v1868_v55 = vpack.c.bf16 %v1866_v50, %v1866_v50 }
 0x539   : > { %v1884_v12 = vsel %vm1883_vm3, %v3027_v6, %v1882_v11 }
 0x53a   : > { %v4497_v58 = vunpack.c.l.bf16 %v1868_v55 }
 0x53c   : > { %v1872_v20 = vsel %vm1592_vm11, %v4497_v58, 0.0 }
 0x554   : > { %v1834_v52 = vpop.permute.xlu0 %1833 }
 0x555   : > { %v1836_v54 = vsel %vm1592_vm11, %v1773_v18, %v1834_v52 }
 0x556   : > { %v1867_v56 = vadd.f32 %v1864_v53, %v1836_v54 }
 0x558   : > { %v1869_v57 = vpack.c.bf16 %v1867_v56, %v1867_v56 }
 0x55a   : > { %v4499_v1 = vunpack.c.l.bf16 %v1869_v57  ;;  %v2750_v57 = vld [vmem:[#allocation20 + $0x8] sm:$0xff] }
 0x55b   : > { %2013 = vmatpush.bf16.msrb.mxu1 %v2750_v57 }
 0x55c   : > { %v3000_v59 = vpack.i.bf16 %v4499_v1, %v4497_v58  ;;  %v1875_v4 = vsel %vm1592_vm11, %v4499_v1, 0.0 }
 0x55e   : > { %3001 = vrot.lane.b32.xlu2 %v3000_v59, %s3865_s0 }
 0x587   : > { %1873 = vadd.xlane.f32.xlu2 %v1872_v20  ;;  %v2749_v20 = vld [vmem:[#allocation20] sm:$0xff] }
 0x588   : > { %2014 = vmatpush.bf16.msrb.mxu1 %v2749_v20 }
 0x5b8   : > { %v3002_v60 = vpop.permute.xlu2 %3001 }
 0x5b9   : > { %v3004_v61 = vunpack.i.h.bf16 %v3002_v60  ;;  %v3003_v62 = vunpack.i.l.bf16 %v3002_v60 }
 0x5bb   : > { %v1914_v63 = vsel %vm1592_vm11, %v3004_v61, 0.0  ;;  %v1911_v3 = vsel %vm1592_vm11, %v3003_v62, 0.0 }
 0x5bc   : > { %1915 = vadd.xlane.f32.xlu1 %v1914_v63  ;;  %1912 = vadd.xlane.f32.xlu0 %v1911_v3  ;;  %v1565_v63 = vsub.f32 0.0, %v4473_v21 }
 0x5be   : > { %v1567_v9 = vmul.f32 1.442695, %v1565_v63 }
 0x5c4   : > { %1876 = vadd.xlane.f32.xlu0 %v1875_v4  ;;  %v1566_v4 = vsub.f32 0.0, %v4475_v22 }
 0x5c6   : > { %v1569_v11 = vmul.f32 1.442695, %v1566_v4  ;;  %v2752_v4 = vld [vmem:[#allocation35 + $0x8] sm:$0xff] }
 0x5c7   : > { %2143 = vmatpush.bf16.msrb.mxu2 %v2752_v4 }
 0x5fa   : > { %v1874_v15 = vpop.xlane.xlu2 %1873 }
 0x5fb   : > { %v1885_v16 = vmul.f32 %v1884_v12, %v1874_v15 }
 0x5fd   : > { %v1887_v17 = vsub.f32 %v4497_v58, %v1885_v16  ;;  %v1899_v27 = vsel %vm4481_vm2, %v1885_v16, 0.0 }
 0x5ff   : > { %v1889_v18 = vmul.f32 %v1887_v17, %v1887_v17 }
 0x601   : > { %v1891_v19 = vsel %vm1592_vm11, %v1889_v18, 0.0  ;;  %v3013_v18 = vld [vmem:[%s4707_s26] ss:$0 sm:$0xff] }
 0x602   : > { %1892 = vadd.xlane.f32.xlu0 %v1891_v19 }
 0x62f   : > { %v1916_v23 = vpop.xlane.xlu1 %1915  ;;  %v1913_v24 = vpop.xlane.xlu0 %1912 }
 0x630   : > { %v1918_v25 = vmul.f32 %v1916_v23, %v1884_v12  ;;  %v1917_v26 = vmul.f32 %v1913_v24, %v1884_v12 }
 0x632   : > { %v1920_v28 = vsub.f32 %v4499_v1, %v1918_v25  ;;  %v1919_v29 = vsub.f32 %v4497_v58, %v1917_v26  ;;  %v4518_v30 = vsel %vm4477_vm1, %v1917_v26, %v1899_v27 }
 0x634   : > { %v1922_v31 = vmul.f32 %v1920_v28, %v1920_v28  ;;  %v1921_v32 = vmul.f32 %v1919_v29, %v1919_v29  ;;  %v3014_v28 = vld [vmem:[#allocation22] ss:$0 sm:$0xff] }
 0x636   : > { %1925 = vrot.lane.b32.xlu1 %v1921_v32, %s3865_s0  ;;  %1927 = vrot.lane.b32.xlu2 %v1922_v31, %s3865_s0  ;;  %s3710_s0 = sshra.s32 %s2272_s7, 4  ;;  %s3711_s0 = int_to_ptr.hbm [resolvable:$true] %s3710_s0 }
 0x637   : > { %v1877_v33 = vpop.xlane.xlu0 %1876  ;;  %s3712_s4 = scalar_lea.hbm %s3711_s0, 16  ;;  %p3717_p1 = scmp.lt.s32.totalorder %s3711_s0, %s4024_s3 }
 0x638   : > { %v1886_v34 = vmul.f32 %v1884_v12, %v1877_v33  ;;  %v1943_v33 = vsub.f32 %v4497_v58, %v4518_v30  ;;  %p3713_p10 = scmp.ne.s32.totalorder %s3711_s0, %s3712_s4  ;;  %p3718_p2 = scmp.lt.s32.totalorder %s3716_s16, %s3712_s4 }
 0x63a   : > { %v1888_v36 = vsub.f32 %v4499_v1, %v1886_v34  ;;  %v1900_v38 = vsel %vm4481_vm2, %v1886_v34, 0.0  ;;  %p3714_p13 = pnand %p3713_p10, %p4064_p5  ;;  %p3719_p3 = por %p3718_p2, %p3717_p1 }
 0x63b   : > { %v1940_v39 = vsel %vm4477_vm1, %v1918_v25, %v1900_v38 }
 0x63c   : > { %v1890_v40 = vmul.f32 %v1888_v36, %v1888_v36  ;;  %v1944_v37 = vsub.f32 %v4499_v1, %v1940_v39  ;;  %p3715_p0 = pneg %p3714_p13 }
 0x63e   : > { %v1894_v41 = vsel %vm1592_vm11, %v1890_v40, 0.0  ;;  %p3720_p4 = pnand %p3719_p3, %p3715_p0 }
 0x63f   : > { %1895 = vadd.xlane.f32.xlu0 %v1894_v41 }
 0x675   : > { %v1893_v46 = vpop.xlane.xlu0 %1892 }
 0x676   : > { %v1897_v60 = vmul.f32 %v1893_v46, %v1884_v12 }
 0x678   : > { %v1901_v5 = vsel %vm4481_vm2, %v1897_v60, 0.0 }
 0x690   : > { %v1928_v42 = vpop.permute.xlu2 %1927 }
 0x691   : > { %v1934_v43 = vsel %vm1592_vm11, %v1928_v42, 0.0 }
 0x692   : > { %1935 = vadd.xlane.f32.xlu1 %v1934_v43 }
 0x6a8   : > { %v1926_v44 = vpop.permute.xlu1 %1925 }
 0x6a9   : > { %v1931_v45 = vsel %vm1592_vm11, %v1926_v44, 0.0 }
 0x6aa   : > { %1932 = vadd.xlane.f32.xlu0 %v1931_v45 }
 0x6b2   : > { %v1896_v48 = vpop.xlane.xlu0 %1895 }
 0x6b3   : > { %v1898_v49 = vmul.f32 %v1896_v48, %v1884_v12 }
 0x6b5   : > { %v1902_v52 = vsel %vm4481_vm2, %v1898_v49, 0.0 }
 0x705   : > { %v1936_v50 = vpop.xlane.xlu1 %1935 }
 0x706   : > { %v1938_v51 = vmul.f32 %v1936_v50, %v1884_v12 }
 0x708   : > { %v1942_v53 = vsel %vm4477_vm1, %v1938_v51, %v1902_v52 }
 0x709   : > { %v1946_v54 = vadd.f32 0.00064, %v1942_v53 }
 0x70b   : > { %3028 = vrsqrt.f32 %v1946_v54  ;;  %vm1963_vm5 = vweird.f32 %v1946_v54 }
 0x711   : > { %v3029_v55 = vpop.eup %3028 }
 0x712   : > { %v1958_v56 = vmul.f32 %v3029_v55, %v1946_v54  ;;  %vm1964_vm4 = vweird.f32 %v3029_v55 }
 0x713   : > { %vm1965_vm6 = vmor %vm1963_vm5, %vm1964_vm4 }
 0x714   : > { %v1959_v59 = vmul.f32 %v3029_v55, %v1958_v56 }
 0x716   : > { %v1960_v61 = vmul.f32 0.5, %v1959_v59 }
 0x718   : > { %v1961_v6 = vsub.f32 1.5, %v1960_v61 }
 0x71a   : > { %v1962_v15 = vmul.f32 %v3029_v55, %v1961_v6  ;;  %v2751_v6 = vld [vmem:[#allocation35] sm:$0xff] }
 0x71b   : > { %2144 = vmatpush.bf16.msrb.mxu2 %v2751_v6 }
 0x71d   : > { %v1933_v62 = vpop.xlane.xlu0 %1932 }
 0x71e   : > { %v1937_v3 = vmul.f32 %v1933_v62, %v1884_v12  ;;  %v1966_v12 = vsel %vm1965_vm6, %v3029_v55, %v1962_v15 }
 0x71f   : > { %v1968_v19 = vmul.f32 %v1966_v12, %v1944_v37 }
 0x720   : > { %v1941_v7 = vsel %vm4477_vm1, %v1937_v3, %v1901_v5  ;;  %v2758_v5 = vld [vmem:[#allocation37 + $0x8] sm:$0xff] }
 0x721   : > { %v1945_v8 = vadd.f32 0.00064, %v1941_v7  ;;  %v1974_v27 = vmul.f32 %v3013_v18, %v1968_v19  ;;  %2232 = vmatpush.bf16.msra.mxu0 %v2758_v5  ;;  %v2757_v7 = vld [vmem:[#allocation37] sm:$0xff] }
 0x723   : > { %3030 = vrsqrt.f32 %v1945_v8  ;;  %vm1953_vm11 = vweird.f32 %v1945_v8  ;;  %v1980_v1 = vadd.f32 %v3014_v28, %v1974_v27 }
 0x724   : > { %3032 = vpow2.f32 %v1567_v9 }
 0x725   : > { %3034 = vpow2.f32 %v1569_v11  ;;  %v1982_v39 = vpack.c.bf16 %v1980_v1, %v1980_v1  ;;  %2233 = vmatpush.bf16.msra.mxu0 %v2757_v7  ;;  %v2024_v1 = vld [vmem:[#allocation34] sm:$0x1] }
 0x727   : > { %v1984_v44 = vunpack.c.l.bf16 %v1982_v39 }
 0x729   : > { %v3031_v16 = vpop.eup %3030 }
 0x72a   : > { %v1948_v17 = vmul.f32 %v3031_v16, %v1945_v8  ;;  %v3033_v35 = vpop.eup %3032  ;;  %vm1954_vm7 = vweird.f32 %v3031_v16 }
 0x72b   : > { %v3035_v24 = vpop.eup %3034  ;;  %v1571_v26 = vadd.f32 1.0, %v3033_v35  ;;  %vm1955_vm12 = vmor %vm1953_vm11, %vm1954_vm7 }
 0x72c   : > { %v1949_v23 = vmul.f32 %v3031_v16, %v1948_v17  ;;  %v1572_v29 = vadd.f32 1.0, %v3035_v24 }
 0x72d   : > { %3036 = vrcp.f32 %v1571_v26  ;;  %v3015_v26 = vld [vmem:[#allocation7] ss:$0 sm:$0xff] }
 0x72e   : > { %v1950_v25 = vmul.f32 0.5, %v1949_v23  ;;  %3038 = vrcp.f32 %v1572_v29  ;;  %v3016_v29 = vld [vmem:[#allocation8] ss:$0 sm:$0xff] }
 0x730   : > { %v1951_v31 = vsub.f32 1.5, %v1950_v25 }
 0x732   : > { %v1952_v32 = vmul.f32 %v3031_v16, %v1951_v31 }
 0x733   : > { %v3037_v40 = vpop.eup %3036 }
 0x734   : > { %v1956_v34 = vsel %vm1955_vm12, %v3031_v16, %v1952_v32  ;;  %v3039_v42 = vpop.eup %3038  ;;  %v1575_v45 = vmul.f32 %v3037_v40, %v4473_v21  ;;  %v2109_v40 = vsub.f32 1.0, %v2024_v1 }
 0x735   : > { %v1967_v36 = vmul.f32 %v1956_v34, %v1943_v33  ;;  %v1576_v46 = vmul.f32 %v3039_v42, %v4475_v22  ;;  %v2023_v33 = vld [vmem:[#allocation32] sm:$0x1] }
 0x736   : > { %v2096_v39 = vsub.f32 1.0, %v2023_v33  ;;  %v3018_v42 = vld [vmem:[#allocation32] ss:$0 sm:$0xff] }
 0x737   : > { %v1973_v38 = vmul.f32 %v3013_v18, %v1967_v36  ;;  %v1986_v50 = vmul.f32 %v1984_v44, %v1576_v46  ;;  %v3017_v44 = vld [vmem:[%s4708_s5] ss:$0 sm:$0xff] }
 0x739   : > { %v1979_v41 = vadd.f32 %v3014_v28, %v1973_v38 }
 0x73b   : > { %v1981_v43 = vpack.c.bf16 %v1979_v41, %v1979_v41 }
 0x73d   : > { %v1983_v48 = vunpack.c.l.bf16 %v1981_v43  ;;  %v3019_v43 = vld [vmem:[#allocation34] ss:$0 sm:$0xff] }
 0x73f   : > { %v1985_v49 = vmul.f32 %v1983_v48, %v1575_v45  ;;  %v2098_v48 = vperm.slane %v2096_v39, 0 }
 0x741   : > { %v1987_v58 = vpack.c.bf16 %v1986_v50, %v1985_v49  ;;  %v2111_v49 = vperm.slane %v2109_v40, 0 }
 0x743   : > { %2698 = vmatmul.msk.bf16.vlgmr.msrb.gmra.mxu1 %vm1269_vm0, %v1987_v58 }
 0x7c0   : > { %v2016_v30 = vpop.f32.mrf.mxu1 }
 0x7c1   : > { %v4548_v51 = vadd.f32 %v2016_v30, %v4390_v0 }
 0x7c3   : > { %v2025_v52 = vsel %vm1269_vm0, %v4548_v51, 0.0 }
 0x7c4   : > { %2026 = vadd.xlane.f32.xlu2 %v2025_v52 }
 0x7c8   : > { %v2018_v53 = vpop.f32.mrf.mxu1 }
 0x7c9   : > { %v4553_v54 = vadd.f32 %v2018_v53, %v4394_v2 }
 0x7cb   : > { %v2028_v21 = vsel %vm1269_vm0, %v4553_v54, 0.0 }
 0x7cc   : > { %2029 = vadd.xlane.f32.xlu0 %v2028_v21 }
 0x837   : > { %v2027_v22 = vpop.xlane.xlu2 %2026 }
 0x838   : > { %v2031_v55 = vmul.f32 %v2027_v22, %v4398_v10 }
 0x83a   : > { %v2033_v56 = vsub.f32 %v4548_v51, %v2031_v55 }
 0x83c   : > { %v2035_v57 = vmul.f32 %v2033_v56, %v2033_v56 }
 0x83e   : > { %v2037_v0 = vsel %vm1269_vm0, %v2035_v57, 0.0 }
 0x83f   : > { %2038 = vadd.xlane.f32.xlu0 %v2037_v0  ;;  %v2030_v59 = vpop.xlane.xlu0 %2029 }
 0x840   : > { %v2032_v20 = vmul.f32 %v2030_v59, %v4398_v10 }
 0x842   : > { %v2034_v60 = vsub.f32 %v4553_v54, %v2032_v20 }
 0x844   : > { %v2036_v2 = vmul.f32 %v2034_v60, %v2034_v60 }
 0x846   : > { %v2040_v61 = vsel %vm1269_vm0, %v2036_v2, 0.0 }
 0x847   : > { %2041 = vadd.xlane.f32.xlu0 %v2040_v61 }
 0x8b2   : > { %v2039_v62 = vpop.xlane.xlu0 %2038 }
 0x8b3   : > { %v2043_v63 = vmul.f32 %v2039_v62, %v4398_v10  ;;  %v2755_v62 = vld [vmem:[%s4014_s19 + $0x10] sm:$0xff] }
 0x8b4   : > { %2197 = vmatpush.bf16.msrb.mxu3 %v2755_v62 }
 0x8b5   : > { %v2045_v3 = vadd.f32 1e-05, %v2043_v63  ;;  %v2754_v63 = vld [vmem:[%s4014_s19 + $0x8] sm:$0xff] }
 0x8b7   : > { %3040 = vrsqrt.f32 %v2045_v3  ;;  %vm2053_vm14 = vweird.f32 %v2045_v3 }
 0x8b8   : > { %2198 = vmatpush.bf16.msrb.mxu3 %v2754_v63 }
 0x8ba   : > { %v2042_v8 = vpop.xlane.xlu0 %2041 }
 0x8bb   : > { %v2044_v9 = vmul.f32 %v2042_v8, %v4398_v10 }
 0x8bd   : > { %v3041_v11 = vpop.eup %3040  ;;  %v2046_v15 = vadd.f32 1e-05, %v2044_v9 }
 0x8be   : > { %v2048_v12 = vmul.f32 %v3041_v11, %v2045_v3  ;;  %vm2054_vm13 = vweird.f32 %v3041_v11  ;;  %v2753_v3 = vld [vmem:[%s4014_s19] sm:$0xff] }
 0x8bf   : > { %3042 = vrsqrt.f32 %v2046_v15  ;;  %vm2055_vm15 = vmor %vm2053_vm14, %vm2054_vm13  ;;  %vm2063_vm2 = vweird.f32 %v2046_v15  ;;  %2199 = vmatpush.bf16.msrb.mxu3 %v2753_v3 }
 0x8c0   : > { %v2049_v16 = vmul.f32 %v3041_v11, %v2048_v12 }
 0x8c2   : > { %v2050_v37 = vmul.f32 0.5, %v2049_v16 }
 0x8c4   : > { %v2051_v17 = vsub.f32 1.5, %v2050_v37 }
 0x8c5   : > { %v3043_v18 = vpop.eup %3042 }
 0x8c6   : > { %v2052_v19 = vmul.f32 %v3041_v11, %v2051_v17  ;;  %v2058_v35 = vmul.f32 %v3043_v18, %v2046_v15  ;;  %vm2064_vm1 = vweird.f32 %v3043_v18 }
 0x8c7   : > { %vm2065_vm3 = vmor %vm2063_vm2, %vm2064_vm1 }
 0x8c8   : > { %v2056_v23 = vsel %vm2055_vm15, %v3041_v11, %v2052_v19  ;;  %v2059_v24 = vmul.f32 %v3043_v18, %v2058_v35 }
 0x8c9   : > { %v2067_v10 = vmul.f32 %v2056_v23, %v2033_v56 }
 0x8ca   : > { %v2060_v25 = vmul.f32 0.5, %v2059_v24 }
 0x8cb   : > { %v2073_v31 = vmul.f32 %v3015_v26, %v2067_v10 }
 0x8cc   : > { %v2061_v27 = vsub.f32 1.5, %v2060_v25 }
 0x8cd   : > { %v2079_v36 = vadd.f32 %v3016_v29, %v2073_v31 }
 0x8ce   : > { %v2062_v28 = vmul.f32 %v3043_v18, %v2061_v27 }
 0x8cf   : > { %v2081_v45 = vrot.slane %v2079_v36, 7  ;;  %v2094_v30 = vmul.f32 %v3018_v42, %v2079_v36  ;;  %v2107_v52 = vmul.f32 %v3019_v43, %v2079_v36 }
 0x8d0   : > { %v2066_v32 = vsel %vm2065_vm3, %v3043_v18, %v2062_v28 }
 0x8d1   : > { %v2068_v34 = vmul.f32 %v2066_v32, %v2034_v60 }
 0x8d3   : > { %v2074_v38 = vmul.f32 %v3015_v26, %v2068_v34 }
 0x8d5   : > { %v2080_v41 = vadd.f32 %v3016_v29, %v2074_v38 }
 0x8d7   : > { %v2082_v46 = vrot.slane %v2080_v41, 7  ;;  %v2095_v22 = vmul.f32 %v3018_v42, %v2080_v41  ;;  %v2108_v55 = vmul.f32 %v3019_v43, %v2080_v41 }
 0x8d9   : > { %v2083_v50 = vsel %vm1337_vm8, %v2081_v45, %v2082_v46  ;;  %v2084_v58 = vsel %vm1337_vm8, %v2082_v46, %v2081_v45  ;;  %vm2188_vm8 = vcmask 523264  }
 0x8da   : > { %v2089_v53 = vsel %vm4415_vm9, %v3017_v44, %v2084_v58  ;;  %v2090_v21 = vsel %vm4419_vm10, %v3017_v44, %v2083_v50 }
 0x8db   : > { %v2100_v56 = vmul.f32 %v2098_v48, %v2089_v53  ;;  %v2101_v57 = vmul.f32 %v2098_v48, %v2090_v21  ;;  %v2113_v0 = vmul.f32 %v2111_v49, %v2089_v53  ;;  %v2114_v59 = vmul.f32 %v2111_v49, %v2090_v21 }
 0x8dd   : > { %v2102_v47 = vadd.f32 %v2100_v56, %v2094_v30  ;;  %v2103_v20 = vadd.f32 %v2101_v57, %v2095_v22  ;;  %v2115_v60 = vadd.f32 %v2113_v0, %v2107_v52  ;;  %v2116_v2 = vadd.f32 %v2114_v59, %v2108_v55 }
 0x8df   : > { %v2117_v61 = vpack.c.bf16 %v2103_v20, %v2102_v47  ;;  %v2206_v13 = vpack.c.bf16 %v2116_v2, %v2115_v60 }
 0x8e1   : > { %2707 = vmatmul.msk.bf16.vlgmr.msrb.gmra.mxu2 %vm1269_vm0, %v2117_v61  ;;  %2733 = vmatmul.msk.bf16.vlgmr.msra.gmra.mxu0 %vm1269_vm0, %v2206_v13 }
 0x95e   : > { %v2235_v15 = vpop.f32.mrf.mxu0 }
 0x95f   : > { %v2240_v12 = vsub.f32 0.0, %v2235_v15 }
 0x961   : > { %v2242_v16 = vmul.f32 1.442695, %v2240_v12 }
 0x963   : > { %3044 = vpow2.f32 %v2242_v16 }
 0x964   : > { %v2146_v4 = vpop.f32.mrf.mxu2 }
 0x965   : > { %v2151_v5 = vmax.f32 %v2146_v4, 0.0 }
 0x966   : > { %v2237_v37 = vpop.f32.mrf.mxu0 }
 0x967   : > { %v2153_v8 = vmul.f32 %v2151_v5, %v2151_v5  ;;  %v2241_v17 = vsub.f32 0.0, %v2237_v37 }
 0x969   : > { %v2244_v18 = vmul.f32 1.442695, %v2241_v17  ;;  %v3045_v19 = vpop.eup %3044 }
 0x96a   : > { %v2246_v35 = vadd.f32 1.0, %v3045_v19 }
 0x96b   : > { %3046 = vpow2.f32 %v2244_v18 }
 0x96c   : > { %v2148_v6 = vpop.f32.mrf.mxu2  ;;  %3048 = vrcp.f32 %v2246_v35 }
 0x96d   : > { %v2152_v7 = vmax.f32 %v2148_v6, 0.0 }
 0x96f   : > { %v2154_v9 = vmul.f32 %v2152_v7, %v2152_v7 }
 0x971   : > { %v2155_v11 = vpack.c.bf16 %v2154_v9, %v2153_v8  ;;  %v3047_v23 = vpop.eup %3046 }
 0x972   : > { %v2247_v24 = vadd.f32 1.0, %v3047_v23  ;;  %v3049_v25 = vpop.eup %3048 }
 0x973   : > { %2724 = vmatmul.msk.bf16.vlgmr.msrb.gmra.mxu3 %vm2188_vm8, %v2155_v11 }
 0x974   : > { %3050 = vrcp.f32 %v2247_v24 }
 0x97a   : > { %v3051_v28 = vpop.eup %3050 }
 0x9f6   : > { %v2201_v26 = vpop.f32.mrf.mxu3 }
 0x9f7   : > { %v2250_v10 = vmul.f32 %v3049_v25, %v2201_v26 }
 0x9f9   : > { %v2252_v27 = vadd.f32 %v2250_v10, %v4548_v51 }
 0x9fb   : > { %2254 = vst.msk [vmem:[%s1248_s22] sm:$0xff] %vm1269_vm0, %v2252_v27 }
 0x9fe   : > { %v2203_v29 = vpop.f32.mrf.mxu3 }
 0x9ff   : > { %v2251_v31 = vmul.f32 %v3051_v28, %v2203_v29 }
 0xa01   : > { %v2253_v32 = vadd.f32 %v2251_v31, %v4553_v54 }
 0xa03   : > { %2255 = vst.msk [vmem:[%s1248_s22 + $0x8] sm:$0xff] %vm1269_vm0, %v2253_v32 }
 0xa04   : > { %3723 = shalt.err (!%p3720_p4)
}
 0xa05   : > { %s3869_s26 = smov 128   ;;  %s3870_s14 = smov 8  }
 0xa06   : > { %2852 = dma.vmem_to_hbm [thread:$0]  (%p4064_p5), %s2270_s1, 256, %s2272_s7, %s2257_s15, %s3869_s26, %s3869_s26, %s3870_s14  }
 0xa07 PF: > { %s4710_s28 = sld [smem:[#allocation74_spill]] }
 0xa08   : > { %s4711_s6 = sld [smem:[#allocation72_spill]] }
 0xa0d   : > { %p2904_p7 = scmp.ge.s32.totalorder %s4710_s28, 2 }
 0xa0e   : > { %s2286_s22 = sand.u32 1, %s4711_s6  }
 0xa0f   : > { %p2855_p8 = pnand %p2904_p7, %p4068_p6  ;;  %s2287_s5 = scalar_lea.sflag [#allocation4], %s2286_s22 }
 0xa11   : > { %p2856_p11 = pneg %p2855_p8 }
 0xa13   : > { %3789 = dma.done.wait (%p2856_p11), %s2287_s5, 256  }
 0xa14   : > { %3791 = vsyncadd (%p2856_p11), %s2287_s5, 4294967040  ;;  %s4713_s11 = sld [smem:[#allocation75_spill]]  ;;  %s4716_s7 = smov %s3798_s10 }
 0xa15   : > { %s4714_s0 = sld [smem:[#allocation73_spill]] }
 0xa16   : > { %s4715_s4 = sld [smem:[#allocation76_spill]] }
 0xa1a   : > { %p81_p12 = scmp.ge.s32.totalorder %s4713_s11, 4  }
 0xa1b   : > { %s4717_s10 = smov %s4714_s0 }
 0xa1c   : > { %s4718_s0 = smov %s4715_s4  ;;  %83 = sbr.rel (!%p81_p12) target bundleno = 70 (0x46), region = 293 }
 0xa21   :  { %2293 = vsyncpa [#allocation3], 1 }
 0xa22   :  { %2295 = vsyncpa [#allocation3 + $0x1], 1 }
 0xa23   :  { %2296 = vsyncpa [#allocation6], 1 }
 0xa24   :  { %2297 = vsyncpa [#allocation9], 1 }
 0xa25   :  { %2298 = vsyncpa [#allocation12], 1 }
 0xa26   :  { %2299 = vsyncpa [#allocation15], 1 }
 0xa27   :  { %2300 = vsyncpa [#allocation18], 1 }
 0xa28   :  { %2301 = vsyncpa [#allocation21], 1 }
 0xa29   :  { %2302 = vsyncpa [#allocation24], 1 }
 0xa2a   :  { %2303 = vsyncpa [#allocation27], 1 }
 0xa2b   :  { %2304 = vsyncpa [#allocation30], 1 }
 0xa2c   :  { %2305 = vsyncpa [#allocation33], 1 }
 0xa2d   :  { %2306 = vsyncpa [#allocation36], 1 }
 0xa2e   :  { %2307 = vsyncpa [#allocation4], 1 }
 0xa2f   :  { %2309 = vsyncpa [#allocation4 + $0x1], 1 }

</bundles_post_ra>
